<compile_context>
chip_gen: v6e
topology: v6e:2x2x1
jax: 0.10.0
libtpu: 0.0.40
codegen_flags: <defaults>
</compile_context>

<pallas_src>
import functools
import math

import jax
import jax.numpy as jnp
import numpy as np
from jax.experimental import pallas as pl
from jax.experimental.pallas import tpu as pltpu


# Kernel gate-column layout: blocks of width 2H = [fwd | rev], block order
# [ f | i | o | g ]  ->  sigmoid over columns [0:6H], tanh over [6H:8H].
_PT_GATE = {"i": 0, "f": 1, "g": 2, "o": 3}   # PyTorch row-block order
_K_GATE = ("f", "i", "o", "g")                # kernel column-block order


# -----------------------------------------------------------------------------
# Fused Pallas kernel
# -----------------------------------------------------------------------------
def _generator_kernel(
    xs_ref,                                   # (T*Bp, 2D)  per-step [x[s] | x[T-1-s]]
    wih1_ref, whh1_ref, b1_ref,               # (2D,8H) (2H,8H) (1,8H)
    wih2f_ref, wih2r_ref, whh2_ref, b2_ref,   # (2H,8H) (2H,8H) (2H,8H) (1,8H)
    wl_ref, bl_ref,                           # (2H,1) (1,1)
    out_ref,                                  # (T*Bp, 1)
    xp_sc,                                    # (T*Bp, 8H) shared projection scratch
    *, seq_len, batch_pad, hidden):
    T, Bp, H = seq_len, batch_pad, hidden
    H2, H6 = 2 * H, 6 * H

    def cell(gates, c_prev):
        # gates: (Bp, 8H) in [f | i | o | g] column order, each block [fwd|rev].
        sg = jax.nn.sigmoid(gates[:, :H6])        # f, i, o
        g_g = jnp.tanh(gates[:, H6:])             # g
        f_g = sg[:, 0:H2]
        i_g = sg[:, H2:2 * H2]
        o_g = sg[:, 2 * H2:3 * H2]
        c_new = f_g * c_prev + i_g * g_g
        h_new = o_g * jnp.tanh(c_new)
        return h_new, c_new

    def run_layer(whh):
        """Both directions of one bidirectional layer in a single fused loop.

        xp_sc row-block s already holds [fwd gate input for time s |
        rev gate input for time T-1-s] with biases folded in.
        Returns a list of T register-resident (Bp, 2H) values, in TIME order,
        each [h_fwd(t) | h_rev(t)].
        """
        h = jnp.zeros((Bp, H2), jnp.float32)      # [hf | hr]
        c = jnp.zeros((Bp, H2), jnp.float32)      # [cf | cr]
        steps = []
        # Fully unrolled: static, tile-aligned offsets, lets the scheduler
        # interleave MXU / EUP / VPU work across adjacent steps.
        for s in range(T):
            xrow = xp_sc[pl.ds(s * Bp, Bp), :]    # whole (8, 8H) tile, aligned
            gates = xrow + jnp.dot(h, whh, preferred_element_type=jnp.float32)
            h, c = cell(gates, c)
            steps.append(h)
        # Re-assemble per-time [h_fwd(t) | h_rev(t)]: the rev half produced at
        # step s belongs to time T-1-s.  Pure list re-ordering + lane select.
        return [jnp.concatenate([steps[t][:, :H], steps[T - 1 - t][:, H:]], axis=1)
                for t in range(T)]

    # ---- layer 1: hoisted input projection (bias folded), then recurrence ----
    xp_sc[...] = (jnp.dot(xs_ref[...], wih1_ref[...],
                          preferred_element_type=jnp.float32) + b1_ref[...])
    h1 = run_layer(whh1_ref[...])

    # Register-resident layer-1 output in forward and reversed time order
    # (reversal is just stacking the same list in the opposite order).
    h1_fwd = jnp.concatenate(h1, axis=0)          # (T*Bp, 2H), time order
    h1_rev = jnp.concatenate(h1[::-1], axis=0)    # (T*Bp, 2H), reversed time

    # ---- layer 2: projection fed directly from registers (no VMEM round trip) ----
    xp_sc[...] = (jnp.dot(h1_fwd, wih2f_ref[...], preferred_element_type=jnp.float32)
                  + jnp.dot(h1_rev, wih2r_ref[...], preferred_element_type=jnp.float32)
                  + b2_ref[...])
    h2 = run_layer(whh2_ref[...])

    # ---- dropout: identity at inference ----
    # ---- fused final Linear(2H -> 1) over the whole (T*Bp, .) slab ----
    h2_cat = jnp.concatenate(h2, axis=0)          # (T*Bp, 2H)
    out_ref[...] = (jnp.dot(h2_cat, wl_ref[...], preferred_element_type=jnp.float32)
                    + bl_ref[...])


# -----------------------------------------------------------------------------
# Wrapper
# -----------------------------------------------------------------------------
_VMEM_SPEC = pl.BlockSpec(memory_space=pltpu.MemorySpace.VMEM)


def bilstm_generator_forward(z, params):
    """z: (B, T, input_dim) -> (B, 1, T). One fused Pallas kernel."""
    B, T, D = z.shape
    H = params["whh1_bd"].shape[0] // 2
    Bp = ((B + 7) // 8) * 8                       # pad batch to a sublane tile

    # time-major, batch zero-padded; per-step rows = [x[t] | x[T-1-t]]
    x_t = jnp.transpose(z, (1, 0, 2)).astype(jnp.float32)        # (T, B, D)
    x_t = jnp.pad(x_t, ((0, 0), (0, Bp - B), (0, 0)))            # (T, Bp, D)
    x_steps = jnp.concatenate([x_t, x_t[::-1]], axis=-1).reshape(T * Bp, 2 * D)

    operands = (
        x_steps,
        params["wih1_bd"], params["whh1_bd"], params["b1"],
        params["wih2f"], params["wih2r"], params["whh2_bd"], params["b2"],
        params["wlin"], params["blin"],
    )

    flops = (2 * (T * Bp) * (2 * D) * (8 * H)          # layer-1 input projection
             + 2 * 2 * (T * Bp) * (2 * H) * (8 * H)    # layer-2 input projection
             + 2 * 2 * T * Bp * (2 * H) * (8 * H)      # fused recurrent matmuls
             + 2 * (T * Bp) * (2 * H))                 # final linear
    transcendentals = 2 * T * Bp * 10 * H
    bytes_accessed = sum(int(np.prod(a.shape)) * 4 for a in operands) + T * Bp * 4

    out_flat = pl.pallas_call(
        functools.partial(_generator_kernel, seq_len=T, batch_pad=Bp, hidden=H),
        out_shape=jax.ShapeDtypeStruct((T * Bp, 1), jnp.float32),
        in_specs=[_VMEM_SPEC] * len(operands),
        out_specs=_VMEM_SPEC,
        scratch_shapes=[
            pltpu.VMEM((T * Bp, 8 * H), jnp.float32),  # shared projection scratch
        ],
        cost_estimate=pl.CostEstimate(
            flops=flops, transcendentals=transcendentals,
            bytes_accessed=bytes_accessed),
    )(*operands)

    out = out_flat.reshape(T, Bp)[:, :B]               # drop batch padding -> (T, B)
    return jnp.transpose(out).reshape(B, 1, T)


# -----------------------------------------------------------------------------
# Parameter construction (PyTorch-style uniform init) + kernel re-layout
# -----------------------------------------------------------------------------
def make_raw_params(key, input_dim, hidden_dim, output_dim):
    def uniform(k, shape, bound):
        return jax.random.uniform(k, shape, jnp.float32, -bound, bound)

    def lstm_dir(k, in_dim, H):
        k1, k2, k3, k4 = jax.random.split(k, 4)
        bound = 1.0 / math.sqrt(H)
        return (uniform(k1, (4 * H, in_dim), bound),   # w_ih (4H, D)  PyTorch layout
                uniform(k2, (4 * H, H), bound),        # w_hh (4H, H)
                uniform(k3, (4 * H,), bound),          # b_ih
                uniform(k4, (4 * H,), bound))          # b_hh

    keys = jax.random.split(key, 6)
    H = hidden_dim
    raw = {
        "lstm1": (lstm_dir(keys[0], input_dim, H), lstm_dir(keys[1], input_dim, H)),
        "lstm2": (lstm_dir(keys[2], 2 * H, H), lstm_dir(keys[3], 2 * H, H)),
    }
    lb = 1.0 / math.sqrt(2 * H)
    raw["lin_w"] = uniform(keys[4], (output_dim, 2 * H), lb)   # PyTorch (O, 2H)
    raw["lin_b"] = uniform(keys[5], (output_dim,), lb)
    return raw


def _scatter_cols(w_dir_t, H, direction):
    """(in_dim, 4H) PyTorch-gate-ordered weights -> (in_dim, 8H) kernel columns."""
    in_dim = w_dir_t.shape[0]
    out = jnp.zeros((in_dim, 8 * H), w_dir_t.dtype)
    for kg, name in enumerate(_K_GATE):
        pt = _PT_GATE[name]
        col0 = kg * 2 * H + direction * H
        out = out.at[:, col0:col0 + H].set(w_dir_t[:, pt * H:(pt + 1) * H])
    return out


def _scatter_bias(b_dir, H, direction):
    out = jnp.zeros((8 * H,), b_dir.dtype)
    for kg, name in enumerate(_K_GATE):
        pt = _PT_GATE[name]
        col0 = kg * 2 * H + direction * H
        out = out.at[col0:col0 + H].set(b_dir[pt * H:(pt + 1) * H])
    return out


def pack_params(raw, hidden_dim):
    """Re-layout raw PyTorch-style LSTM/Linear weights for the fused kernel."""
    H = hidden_dim
    (wih1f, whh1f, bih1f, bhh1f), (wih1r, whh1r, bih1r, bhh1r) = raw["lstm1"]
    (wih2f, whh2f, bih2f, bhh2f), (wih2r, whh2r, bih2r, bhh2r) = raw["lstm2"]

    # layer-1 input projection: block-diag over [x[t] | x[T-1-t]] rows
    wih1_bd = jnp.concatenate(
        [_scatter_cols(wih1f.T, H, 0), _scatter_cols(wih1r.T, H, 1)], axis=0)
    # block-diag recurrent weights: rows [hf | hr] -> columns [fwd | rev] per gate
    whh1_bd = jnp.concatenate(
        [_scatter_cols(whh1f.T, H, 0), _scatter_cols(whh1r.T, H, 1)], axis=0)
    b1 = (_scatter_bias(bih1f + bhh1f, H, 0)
          + _scatter_bias(bih1r + bhh1r, H, 1)).reshape(1, 8 * H)

    # layer-2 input projections, fed by time-ordered / time-reversed h1 slabs
    wih2f_pad = _scatter_cols(wih2f.T, H, 0)        # (2H, 8H), fwd columns only
    wih2r_pad = _scatter_cols(wih2r.T, H, 1)        # (2H, 8H), rev columns only
    whh2_bd = jnp.concatenate(
        [_scatter_cols(whh2f.T, H, 0), _scatter_cols(whh2r.T, H, 1)], axis=0)
    b2 = (_scatter_bias(bih2f + bhh2f, H, 0)
          + _scatter_bias(bih2r + bhh2r, H, 1)).reshape(1, 8 * H)

    return {
        "wih1_bd": wih1_bd, "whh1_bd": whh1_bd, "b1": b1,
        "wih2f": wih2f_pad, "wih2r": wih2r_pad, "whh2_bd": whh2_bd, "b2": b2,
        "wlin": raw["lin_w"].T, "blin": raw["lin_b"].reshape(1, -1),
    }


# -----------------------------------------------------------------------------
# Pure-JAX reference (for a correctness sanity check)
# -----------------------------------------------------------------------------
def _lstm_dir_ref(x_tbd, w_ih, w_hh, b_ih, b_hh):
    H = w_hh.shape[1]
    B = x_tbd.shape[1]
    wih_t, whh_t = w_ih.T, w_hh.T
    b = (b_ih + b_hh)[None, :]

    def step(carry, x_t):
        h, c = carry
        gates = x_t @ wih_t + h @ whh_t + b
        i = jax.nn.sigmoid(gates[:, :H])
        f = jax.nn.sigmoid(gates[:, H:2 * H])
        g = jnp.tanh(gates[:, 2 * H:3 * H])
        o = jax.nn.sigmoid(gates[:, 3 * H:])
        c = f * c + i * g
        h = o * jnp.tanh(c)
        return (h, c), h

    init = (jnp.zeros((B, H), jnp.float32), jnp.zeros((B, H), jnp.float32))
    _, hs = jax.lax.scan(step, init, x_tbd)
    return hs


def forward_ref(z, raw):
    def bilayer(x, layer):
        pf, pr = layer
        x_t = jnp.transpose(x, (1, 0, 2))
        hf = _lstm_dir_ref(x_t, *pf)
        hr = jnp.flip(_lstm_dir_ref(jnp.flip(x_t, 0), *pr), 0)
        return jnp.transpose(jnp.concatenate([hf, hr], -1), (1, 0, 2))

    B, T, _ = z.shape
    h = bilayer(bilayer(z, raw["lstm1"]), raw["lstm2"])
    out = h.reshape(B * T, -1) @ raw["lin_w"].T + raw["lin_b"]
    return out.reshape(B, T, -1).reshape(B, 1, T)


# -----------------------------------------------------------------------------
if __name__ == "__main__":
    input_dim = 8
    hidden_dim = 32
    output_dim = 1      # forward's reshape(B, 1, T) implies output_dim == 1
    batch = 2
    seq_len = 8

    root = jax.random.PRNGKey(0)
    k_param, k_data = jax.random.split(root)
    raw = make_raw_params(k_param, input_dim, hidden_dim, output_dim)
    params = pack_params(raw, hidden_dim)
    z = jax.random.normal(k_data, (batch, seq_len, input_dim), jnp.float32)

    fwd = jax.jit(functools.partial(bilstm_generator_forward, params=params))
    out = fwd(z)
    jax.block_until_ready(out)

    ref = forward_ref(z, raw)
    np.testing.assert_allclose(np.asarray(out), np.asarray(ref), rtol=1e-4, atol=1e-5)
    assert out.shape == (batch, 1, seq_len)

    print("KERNEL_OK")
</pallas_src>

<mosaic_0001>
module attributes {stable_mosaic.version = 11 : i64} {
  func.func @_generator_kernel(%arg0: memref<64x16xf32, #tpu.memory_space<vmem>>, %arg1: memref<16x256xf32, #tpu.memory_space<vmem>>, %arg2: memref<64x256xf32, #tpu.memory_space<vmem>>, %arg3: memref<1x256xf32, #tpu.memory_space<vmem>>, %arg4: memref<64x256xf32, #tpu.memory_space<vmem>>, %arg5: memref<64x256xf32, #tpu.memory_space<vmem>>, %arg6: memref<64x256xf32, #tpu.memory_space<vmem>>, %arg7: memref<1x256xf32, #tpu.memory_space<vmem>>, %arg8: memref<64x1xf32, #tpu.memory_space<vmem>>, %arg9: memref<1x1xf32, #tpu.memory_space<vmem>>, %arg10: memref<64x1xf32, #tpu.memory_space<vmem>>, %arg11: memref<64x256xf32, #tpu.memory_space<vmem>>) attributes {dimension_semantics = [], scalar_prefetch = 0 : i64, scratch_operands = 1 : i64, tpu.core_type = #tpu.core_type<tc>} {
    %c0 = arith.constant 0 : index
    %c0_0 = arith.constant 0 : index
    %0 = vector.load %arg0[%c0, %c0_0] : memref<64x16xf32, #tpu.memory_space<vmem>>, vector<64x16xf32>
    %c0_1 = arith.constant 0 : index
    %c0_2 = arith.constant 0 : index
    %1 = vector.load %arg1[%c0_1, %c0_2] : memref<16x256xf32, #tpu.memory_space<vmem>>, vector<16x256xf32>
    %cst = arith.constant dense<0.000000e+00> : vector<64x256xf32>
    %2 = tpu.matmul %0, %1, %cst {dimension_numbers = #tpu.dot_dimension_numbers<[1], [0], [0], [1], [0, 0, 1, 1], [], []>} : vector<64x16xf32>, vector<16x256xf32>, vector<64x256xf32> -> vector<64x256xf32>
    %c0_3 = arith.constant 0 : index
    %c0_4 = arith.constant 0 : index
    %3 = vector.load %arg3[%c0_3, %c0_4] : memref<1x256xf32, #tpu.memory_space<vmem>>, vector<1x256xf32>
    %4 = vector.broadcast %3 : vector<1x256xf32> to vector<64x256xf32>
    %5 = arith.addf %2, %4 : vector<64x256xf32>
    %c0_5 = arith.constant 0 : index
    %c0_6 = arith.constant 0 : index
    %6 = vector.load %arg11[%c0_5, %c0_6] : memref<64x256xf32, #tpu.memory_space<vmem>>, vector<64x256xf32>
    tpu.vector_store %arg11[%c0_5, %c0_6], %5 {strides = array<i32>} : memref<64x256xf32, #tpu.memory_space<vmem>>, vector<64x256xf32>,
    %c0_7 = arith.constant 0 : index
    %c0_8 = arith.constant 0 : index
    %7 = vector.load %arg2[%c0_7, %c0_8] : memref<64x256xf32, #tpu.memory_space<vmem>>, vector<64x256xf32>
    %cst_9 = arith.constant 0.000000e+00 : f32
    %8 = vector.broadcast %cst_9 : f32 to vector<8x64xf32>
    %cst_10 = arith.constant 0.000000e+00 : f32
    %9 = vector.broadcast %cst_10 : f32 to vector<8x64xf32>
    %c0_11 = arith.constant 0 : index
    %c0_12 = arith.constant 0 : index
    %10 = vector.load %arg11[%c0_11, %c0_12] : memref<64x256xf32, #tpu.memory_space<vmem>>, vector<8x256xf32>
    %cst_13 = arith.constant dense<0.000000e+00> : vector<8x256xf32>
    %11 = tpu.matmul %8, %7, %cst_13 {dimension_numbers = #tpu.dot_dimension_numbers<[1], [0], [0], [1], [0, 0, 1, 1], [], []>} : vector<8x64xf32>, vector<64x256xf32>, vector<8x256xf32> -> vector<8x256xf32>
    %12 = arith.addf %10, %11 : vector<8x256xf32>
    %13 = vector.extract_strided_slice %12 {offsets = [0, 0], sizes = [8, 192], strides = [1, 1]} : vector<8x256xf32> to vector<8x192xf32>
    %14 = arith.negf %13 : vector<8x192xf32>
    %15 = math.exp %14 : vector<8x192xf32>
    %cst_14 = arith.constant 1.000000e+00 : f32
    %16 = vector.broadcast %cst_14 : f32 to vector<8x192xf32>
    %17 = arith.addf %16, %15 : vector<8x192xf32>
    %18 = arith.divf %16, %17 : vector<8x192xf32>
    %19 = vector.extract_strided_slice %12 {offsets = [0, 192], sizes = [8, 64], strides = [1, 1]} : vector<8x256xf32> to vector<8x64xf32>
    %20 = math.tanh %19 : vector<8x64xf32>
    %21 = vector.extract_strided_slice %18 {offsets = [0, 0], sizes = [8, 64], strides = [1, 1]} : vector<8x192xf32> to vector<8x64xf32>
    %22 = vector.extract_strided_slice %18 {offsets = [0, 64], sizes = [8, 64], strides = [1, 1]} : vector<8x192xf32> to vector<8x64xf32>
    %23 = vector.extract_strided_slice %18 {offsets = [0, 128], sizes = [8, 64], strides = [1, 1]} : vector<8x192xf32> to vector<8x64xf32>
    %24 = arith.mulf %21, %9 : vector<8x64xf32>
    %25 = arith.mulf %22, %20 : vector<8x64xf32>
    %26 = arith.addf %24, %25 : vector<8x64xf32>
    %27 = math.tanh %26 : vector<8x64xf32>
    %28 = arith.mulf %23, %27 : vector<8x64xf32>
    %c8 = arith.constant 8 : index
    %c0_15 = arith.constant 0 : index
    %29 = vector.load %arg11[%c8, %c0_15] : memref<64x256xf32, #tpu.memory_space<vmem>>, vector<8x256xf32>
    %cst_16 = arith.constant dense<0.000000e+00> : vector<8x256xf32>
    %30 = tpu.matmul %28, %7, %cst_16 {dimension_numbers = #tpu.dot_dimension_numbers<[1], [0], [0], [1], [0, 0, 1, 1], [], []>} : vector<8x64xf32>, vector<64x256xf32>, vector<8x256xf32> -> vector<8x256xf32>
    %31 = arith.addf %29, %30 : vector<8x256xf32>
    %32 = vector.extract_strided_slice %31 {offsets = [0, 0], sizes = [8, 192], strides = [1, 1]} : vector<8x256xf32> to vector<8x192xf32>
    %33 = arith.negf %32 : vector<8x192xf32>
    %34 = math.exp %33 : vector<8x192xf32>
    %cst_17 = arith.constant 1.000000e+00 : f32
    %35 = vector.broadcast %cst_17 : f32 to vector<8x192xf32>
    %36 = arith.addf %35, %34 : vector<8x192xf32>
    %37 = arith.divf %35, %36 : vector<8x192xf32>
    %38 = vector.extract_strided_slice %31 {offsets = [0, 192], sizes = [8, 64], strides = [1, 1]} : vector<8x256xf32> to vector<8x64xf32>
    %39 = math.tanh %38 : vector<8x64xf32>
    %40 = vector.extract_strided_slice %37 {offsets = [0, 0], sizes = [8, 64], strides = [1, 1]} : vector<8x192xf32> to vector<8x64xf32>
    %41 = vector.extract_strided_slice %37 {offsets = [0, 64], sizes = [8, 64], strides = [1, 1]} : vector<8x192xf32> to vector<8x64xf32>
    %42 = vector.extract_strided_slice %37 {offsets = [0, 128], sizes = [8, 64], strides = [1, 1]} : vector<8x192xf32> to vector<8x64xf32>
    %43 = arith.mulf %40, %26 : vector<8x64xf32>
    %44 = arith.mulf %41, %39 : vector<8x64xf32>
    %45 = arith.addf %43, %44 : vector<8x64xf32>
    %46 = math.tanh %45 : vector<8x64xf32>
    %47 = arith.mulf %42, %46 : vector<8x64xf32>
    %c16 = arith.constant 16 : index
    %c0_18 = arith.constant 0 : index
    %48 = vector.load %arg11[%c16, %c0_18] : memref<64x256xf32, #tpu.memory_space<vmem>>, vector<8x256xf32>
    %cst_19 = arith.constant dense<0.000000e+00> : vector<8x256xf32>
    %49 = tpu.matmul %47, %7, %cst_19 {dimension_numbers = #tpu.dot_dimension_numbers<[1], [0], [0], [1], [0, 0, 1, 1], [], []>} : vector<8x64xf32>, vector<64x256xf32>, vector<8x256xf32> -> vector<8x256xf32>
    %50 = arith.addf %48, %49 : vector<8x256xf32>
    %51 = vector.extract_strided_slice %50 {offsets = [0, 0], sizes = [8, 192], strides = [1, 1]} : vector<8x256xf32> to vector<8x192xf32>
    %52 = arith.negf %51 : vector<8x192xf32>
    %53 = math.exp %52 : vector<8x192xf32>
    %cst_20 = arith.constant 1.000000e+00 : f32
    %54 = vector.broadcast %cst_20 : f32 to vector<8x192xf32>
    %55 = arith.addf %54, %53 : vector<8x192xf32>
    %56 = arith.divf %54, %55 : vector<8x192xf32>
    %57 = vector.extract_strided_slice %50 {offsets = [0, 192], sizes = [8, 64], strides = [1, 1]} : vector<8x256xf32> to vector<8x64xf32>
    %58 = math.tanh %57 : vector<8x64xf32>
    %59 = vector.extract_strided_slice %56 {offsets = [0, 0], sizes = [8, 64], strides = [1, 1]} : vector<8x192xf32> to vector<8x64xf32>
    %60 = vector.extract_strided_slice %56 {offsets = [0, 64], sizes = [8, 64], strides = [1, 1]} : vector<8x192xf32> to vector<8x64xf32>
    %61 = vector.extract_strided_slice %56 {offsets = [0, 128], sizes = [8, 64], strides = [1, 1]} : vector<8x192xf32> to vector<8x64xf32>
    %62 = arith.mulf %59, %45 : vector<8x64xf32>
    %63 = arith.mulf %60, %58 : vector<8x64xf32>
    %64 = arith.addf %62, %63 : vector<8x64xf32>
    %65 = math.tanh %64 : vector<8x64xf32>
    %66 = arith.mulf %61, %65 : vector<8x64xf32>
    %c24 = arith.constant 24 : index
    %c0_21 = arith.constant 0 : index
    %67 = vector.load %arg11[%c24, %c0_21] : memref<64x256xf32, #tpu.memory_space<vmem>>, vector<8x256xf32>
    %cst_22 = arith.constant dense<0.000000e+00> : vector<8x256xf32>
    %68 = tpu.matmul %66, %7, %cst_22 {dimension_numbers = #tpu.dot_dimension_numbers<[1], [0], [0], [1], [0, 0, 1, 1], [], []>} : vector<8x64xf32>, vector<64x256xf32>, vector<8x256xf32> -> vector<8x256xf32>
    %69 = arith.addf %67, %68 : vector<8x256xf32>
    %70 = vector.extract_strided_slice %69 {offsets = [0, 0], sizes = [8, 192], strides = [1, 1]} : vector<8x256xf32> to vector<8x192xf32>
    %71 = arith.negf %70 : vector<8x192xf32>
    %72 = math.exp %71 : vector<8x192xf32>
    %cst_23 = arith.constant 1.000000e+00 : f32
    %73 = vector.broadcast %cst_23 : f32 to vector<8x192xf32>
    %74 = arith.addf %73, %72 : vector<8x192xf32>
    %75 = arith.divf %73, %74 : vector<8x192xf32>
    %76 = vector.extract_strided_slice %69 {offsets = [0, 192], sizes = [8, 64], strides = [1, 1]} : vector<8x256xf32> to vector<8x64xf32>
    %77 = math.tanh %76 : vector<8x64xf32>
    %78 = vector.extract_strided_slice %75 {offsets = [0, 0], sizes = [8, 64], strides = [1, 1]} : vector<8x192xf32> to vector<8x64xf32>
    %79 = vector.extract_strided_slice %75 {offsets = [0, 64], sizes = [8, 64], strides = [1, 1]} : vector<8x192xf32> to vector<8x64xf32>
    %80 = vector.extract_strided_slice %75 {offsets = [0, 128], sizes = [8, 64], strides = [1, 1]} : vector<8x192xf32> to vector<8x64xf32>
    %81 = arith.mulf %78, %64 : vector<8x64xf32>
    %82 = arith.mulf %79, %77 : vector<8x64xf32>
    %83 = arith.addf %81, %82 : vector<8x64xf32>
    %84 = math.tanh %83 : vector<8x64xf32>
    %85 = arith.mulf %80, %84 : vector<8x64xf32>
    %c32 = arith.constant 32 : index
    %c0_24 = arith.constant 0 : index
    %86 = vector.load %arg11[%c32, %c0_24] : memref<64x256xf32, #tpu.memory_space<vmem>>, vector<8x256xf32>
    %cst_25 = arith.constant dense<0.000000e+00> : vector<8x256xf32>
    %87 = tpu.matmul %85, %7, %cst_25 {dimension_numbers = #tpu.dot_dimension_numbers<[1], [0], [0], [1], [0, 0, 1, 1], [], []>} : vector<8x64xf32>, vector<64x256xf32>, vector<8x256xf32> -> vector<8x256xf32>
    %88 = arith.addf %86, %87 : vector<8x256xf32>
    %89 = vector.extract_strided_slice %88 {offsets = [0, 0], sizes = [8, 192], strides = [1, 1]} : vector<8x256xf32> to vector<8x192xf32>
    %90 = arith.negf %89 : vector<8x192xf32>
    %91 = math.exp %90 : vector<8x192xf32>
    %cst_26 = arith.constant 1.000000e+00 : f32
    %92 = vector.broadcast %cst_26 : f32 to vector<8x192xf32>
    %93 = arith.addf %92, %91 : vector<8x192xf32>
    %94 = arith.divf %92, %93 : vector<8x192xf32>
    %95 = vector.extract_strided_slice %88 {offsets = [0, 192], sizes = [8, 64], strides = [1, 1]} : vector<8x256xf32> to vector<8x64xf32>
    %96 = math.tanh %95 : vector<8x64xf32>
    %97 = vector.extract_strided_slice %94 {offsets = [0, 0], sizes = [8, 64], strides = [1, 1]} : vector<8x192xf32> to vector<8x64xf32>
    %98 = vector.extract_strided_slice %94 {offsets = [0, 64], sizes = [8, 64], strides = [1, 1]} : vector<8x192xf32> to vector<8x64xf32>
    %99 = vector.extract_strided_slice %94 {offsets = [0, 128], sizes = [8, 64], strides = [1, 1]} : vector<8x192xf32> to vector<8x64xf32>
    %100 = arith.mulf %97, %83 : vector<8x64xf32>
    %101 = arith.mulf %98, %96 : vector<8x64xf32>
    %102 = arith.addf %100, %101 : vector<8x64xf32>
    %103 = math.tanh %102 : vector<8x64xf32>
    %104 = arith.mulf %99, %103 : vector<8x64xf32>
    %c40 = arith.constant 40 : index
    %c0_27 = arith.constant 0 : index
    %105 = vector.load %arg11[%c40, %c0_27] : memref<64x256xf32, #tpu.memory_space<vmem>>, vector<8x256xf32>
    %cst_28 = arith.constant dense<0.000000e+00> : vector<8x256xf32>
    %106 = tpu.matmul %104, %7, %cst_28 {dimension_numbers = #tpu.dot_dimension_numbers<[1], [0], [0], [1], [0, 0, 1, 1], [], []>} : vector<8x64xf32>, vector<64x256xf32>, vector<8x256xf32> -> vector<8x256xf32>
    %107 = arith.addf %105, %106 : vector<8x256xf32>
    %108 = vector.extract_strided_slice %107 {offsets = [0, 0], sizes = [8, 192], strides = [1, 1]} : vector<8x256xf32> to vector<8x192xf32>
    %109 = arith.negf %108 : vector<8x192xf32>
    %110 = math.exp %109 : vector<8x192xf32>
    %cst_29 = arith.constant 1.000000e+00 : f32
    %111 = vector.broadcast %cst_29 : f32 to vector<8x192xf32>
    %112 = arith.addf %111, %110 : vector<8x192xf32>
    %113 = arith.divf %111, %112 : vector<8x192xf32>
    %114 = vector.extract_strided_slice %107 {offsets = [0, 192], sizes = [8, 64], strides = [1, 1]} : vector<8x256xf32> to vector<8x64xf32>
    %115 = math.tanh %114 : vector<8x64xf32>
    %116 = vector.extract_strided_slice %113 {offsets = [0, 0], sizes = [8, 64], strides = [1, 1]} : vector<8x192xf32> to vector<8x64xf32>
    %117 = vector.extract_strided_slice %113 {offsets = [0, 64], sizes = [8, 64], strides = [1, 1]} : vector<8x192xf32> to vector<8x64xf32>
    %118 = vector.extract_strided_slice %113 {offsets = [0, 128], sizes = [8, 64], strides = [1, 1]} : vector<8x192xf32> to vector<8x64xf32>
    %119 = arith.mulf %116, %102 : vector<8x64xf32>
    %120 = arith.mulf %117, %115 : vector<8x64xf32>
    %121 = arith.addf %119, %120 : vector<8x64xf32>
    %122 = math.tanh %121 : vector<8x64xf32>
    %123 = arith.mulf %118, %122 : vector<8x64xf32>
    %c48 = arith.constant 48 : index
    %c0_30 = arith.constant 0 : index
    %124 = vector.load %arg11[%c48, %c0_30] : memref<64x256xf32, #tpu.memory_space<vmem>>, vector<8x256xf32>
    %cst_31 = arith.constant dense<0.000000e+00> : vector<8x256xf32>
    %125 = tpu.matmul %123, %7, %cst_31 {dimension_numbers = #tpu.dot_dimension_numbers<[1], [0], [0], [1], [0, 0, 1, 1], [], []>} : vector<8x64xf32>, vector<64x256xf32>, vector<8x256xf32> -> vector<8x256xf32>
    %126 = arith.addf %124, %125 : vector<8x256xf32>
    %127 = vector.extract_strided_slice %126 {offsets = [0, 0], sizes = [8, 192], strides = [1, 1]} : vector<8x256xf32> to vector<8x192xf32>
    %128 = arith.negf %127 : vector<8x192xf32>
    %129 = math.exp %128 : vector<8x192xf32>
    %cst_32 = arith.constant 1.000000e+00 : f32
    %130 = vector.broadcast %cst_32 : f32 to vector<8x192xf32>
    %131 = arith.addf %130, %129 : vector<8x192xf32>
    %132 = arith.divf %130, %131 : vector<8x192xf32>
    %133 = vector.extract_strided_slice %126 {offsets = [0, 192], sizes = [8, 64], strides = [1, 1]} : vector<8x256xf32> to vector<8x64xf32>
    %134 = math.tanh %133 : vector<8x64xf32>
    %135 = vector.extract_strided_slice %132 {offsets = [0, 0], sizes = [8, 64], strides = [1, 1]} : vector<8x192xf32> to vector<8x64xf32>
    %136 = vector.extract_strided_slice %132 {offsets = [0, 64], sizes = [8, 64], strides = [1, 1]} : vector<8x192xf32> to vector<8x64xf32>
    %137 = vector.extract_strided_slice %132 {offsets = [0, 128], sizes = [8, 64], strides = [1, 1]} : vector<8x192xf32> to vector<8x64xf32>
    %138 = arith.mulf %135, %121 : vector<8x64xf32>
    %139 = arith.mulf %136, %134 : vector<8x64xf32>
    %140 = arith.addf %138, %139 : vector<8x64xf32>
    %141 = math.tanh %140 : vector<8x64xf32>
    %142 = arith.mulf %137, %141 : vector<8x64xf32>
    %c56 = arith.constant 56 : index
    %c0_33 = arith.constant 0 : index
    %143 = vector.load %arg11[%c56, %c0_33] : memref<64x256xf32, #tpu.memory_space<vmem>>, vector<8x256xf32>
    %cst_34 = arith.constant dense<0.000000e+00> : vector<8x256xf32>
    %144 = tpu.matmul %142, %7, %cst_34 {dimension_numbers = #tpu.dot_dimension_numbers<[1], [0], [0], [1], [0, 0, 1, 1], [], []>} : vector<8x64xf32>, vector<64x256xf32>, vector<8x256xf32> -> vector<8x256xf32>
    %145 = arith.addf %143, %144 : vector<8x256xf32>
    %146 = vector.extract_strided_slice %145 {offsets = [0, 0], sizes = [8, 192], strides = [1, 1]} : vector<8x256xf32> to vector<8x192xf32>
    %147 = arith.negf %146 : vector<8x192xf32>
    %148 = math.exp %147 : vector<8x192xf32>
    %cst_35 = arith.constant 1.000000e+00 : f32
    %149 = vector.broadcast %cst_35 : f32 to vector<8x192xf32>
    %150 = arith.addf %149, %148 : vector<8x192xf32>
    %151 = arith.divf %149, %150 : vector<8x192xf32>
    %152 = vector.extract_strided_slice %145 {offsets = [0, 192], sizes = [8, 64], strides = [1, 1]} : vector<8x256xf32> to vector<8x64xf32>
    %153 = math.tanh %152 : vector<8x64xf32>
    %154 = vector.extract_strided_slice %151 {offsets = [0, 0], sizes = [8, 64], strides = [1, 1]} : vector<8x192xf32> to vector<8x64xf32>
    %155 = vector.extract_strided_slice %151 {offsets = [0, 64], sizes = [8, 64], strides = [1, 1]} : vector<8x192xf32> to vector<8x64xf32>
    %156 = vector.extract_strided_slice %151 {offsets = [0, 128], sizes = [8, 64], strides = [1, 1]} : vector<8x192xf32> to vector<8x64xf32>
    %157 = arith.mulf %154, %140 : vector<8x64xf32>
    %158 = arith.mulf %155, %153 : vector<8x64xf32>
    %159 = arith.addf %157, %158 : vector<8x64xf32>
    %160 = math.tanh %159 : vector<8x64xf32>
    %161 = arith.mulf %156, %160 : vector<8x64xf32>
    %162 = vector.extract_strided_slice %28 {offsets = [0, 0], sizes = [8, 32], strides = [1, 1]} : vector<8x64xf32> to vector<8x32xf32>
    %163 = vector.extract_strided_slice %161 {offsets = [0, 32], sizes = [8, 32], strides = [1, 1]} : vector<8x64xf32> to vector<8x32xf32>
    %164 = tpu.concatenate %162, %163 in 1 : vector<8x32xf32>, vector<8x32xf32> -> vector<8x64xf32>
    %165 = vector.extract_strided_slice %47 {offsets = [0, 0], sizes = [8, 32], strides = [1, 1]} : vector<8x64xf32> to vector<8x32xf32>
    %166 = vector.extract_strided_slice %142 {offsets = [0, 32], sizes = [8, 32], strides = [1, 1]} : vector<8x64xf32> to vector<8x32xf32>
    %167 = tpu.concatenate %165, %166 in 1 : vector<8x32xf32>, vector<8x32xf32> -> vector<8x64xf32>
    %168 = vector.extract_strided_slice %66 {offsets = [0, 0], sizes = [8, 32], strides = [1, 1]} : vector<8x64xf32> to vector<8x32xf32>
    %169 = vector.extract_strided_slice %123 {offsets = [0, 32], sizes = [8, 32], strides = [1, 1]} : vector<8x64xf32> to vector<8x32xf32>
    %170 = tpu.concatenate %168, %169 in 1 : vector<8x32xf32>, vector<8x32xf32> -> vector<8x64xf32>
    %171 = vector.extract_strided_slice %85 {offsets = [0, 0], sizes = [8, 32], strides = [1, 1]} : vector<8x64xf32> to vector<8x32xf32>
    %172 = vector.extract_strided_slice %104 {offsets = [0, 32], sizes = [8, 32], strides = [1, 1]} : vector<8x64xf32> to vector<8x32xf32>
    %173 = tpu.concatenate %171, %172 in 1 : vector<8x32xf32>, vector<8x32xf32> -> vector<8x64xf32>
    %174 = vector.extract_strided_slice %104 {offsets = [0, 0], sizes = [8, 32], strides = [1, 1]} : vector<8x64xf32> to vector<8x32xf32>
    %175 = vector.extract_strided_slice %85 {offsets = [0, 32], sizes = [8, 32], strides = [1, 1]} : vector<8x64xf32> to vector<8x32xf32>
    %176 = tpu.concatenate %174, %175 in 1 : vector<8x32xf32>, vector<8x32xf32> -> vector<8x64xf32>
    %177 = vector.extract_strided_slice %123 {offsets = [0, 0], sizes = [8, 32], strides = [1, 1]} : vector<8x64xf32> to vector<8x32xf32>
    %178 = vector.extract_strided_slice %66 {offsets = [0, 32], sizes = [8, 32], strides = [1, 1]} : vector<8x64xf32> to vector<8x32xf32>
    %179 = tpu.concatenate %177, %178 in 1 : vector<8x32xf32>, vector<8x32xf32> -> vector<8x64xf32>
    %180 = vector.extract_strided_slice %142 {offsets = [0, 0], sizes = [8, 32], strides = [1, 1]} : vector<8x64xf32> to vector<8x32xf32>
    %181 = vector.extract_strided_slice %47 {offsets = [0, 32], sizes = [8, 32], strides = [1, 1]} : vector<8x64xf32> to vector<8x32xf32>
    %182 = tpu.concatenate %180, %181 in 1 : vector<8x32xf32>, vector<8x32xf32> -> vector<8x64xf32>
    %183 = vector.extract_strided_slice %161 {offsets = [0, 0], sizes = [8, 32], strides = [1, 1]} : vector<8x64xf32> to vector<8x32xf32>
    %184 = vector.extract_strided_slice %28 {offsets = [0, 32], sizes = [8, 32], strides = [1, 1]} : vector<8x64xf32> to vector<8x32xf32>
    %185 = tpu.concatenate %183, %184 in 1 : vector<8x32xf32>, vector<8x32xf32> -> vector<8x64xf32>
    %186 = tpu.concatenate %164, %167, %170, %173, %176, %179, %182, %185 in 0 : vector<8x64xf32>, vector<8x64xf32>, vector<8x64xf32>, vector<8x64xf32>, vector<8x64xf32>, vector<8x64xf32>, vector<8x64xf32>, vector<8x64xf32> -> vector<64x64xf32>
    %187 = tpu.concatenate %185, %182, %179, %176, %173, %170, %167, %164 in 0 : vector<8x64xf32>, vector<8x64xf32>, vector<8x64xf32>, vector<8x64xf32>, vector<8x64xf32>, vector<8x64xf32>, vector<8x64xf32>, vector<8x64xf32> -> vector<64x64xf32>
    %c0_36 = arith.constant 0 : index
    %c0_37 = arith.constant 0 : index
    %188 = vector.load %arg4[%c0_36, %c0_37] : memref<64x256xf32, #tpu.memory_space<vmem>>, vector<64x256xf32>
    %cst_38 = arith.constant dense<0.000000e+00> : vector<64x256xf32>
    %189 = tpu.matmul %186, %188, %cst_38 {dimension_numbers = #tpu.dot_dimension_numbers<[1], [0], [0], [1], [0, 0, 1, 1], [], []>} : vector<64x64xf32>, vector<64x256xf32>, vector<64x256xf32> -> vector<64x256xf32>
    %c0_39 = arith.constant 0 : index
    %c0_40 = arith.constant 0 : index
    %190 = vector.load %arg5[%c0_39, %c0_40] : memref<64x256xf32, #tpu.memory_space<vmem>>, vector<64x256xf32>
    %cst_41 = arith.constant dense<0.000000e+00> : vector<64x256xf32>
    %191 = tpu.matmul %187, %190, %cst_41 {dimension_numbers = #tpu.dot_dimension_numbers<[1], [0], [0], [1], [0, 0, 1, 1], [], []>} : vector<64x64xf32>, vector<64x256xf32>, vector<64x256xf32> -> vector<64x256xf32>
    %192 = arith.addf %189, %191 : vector<64x256xf32>
    %c0_42 = arith.constant 0 : index
    %c0_43 = arith.constant 0 : index
    %193 = vector.load %arg7[%c0_42, %c0_43] : memref<1x256xf32, #tpu.memory_space<vmem>>, vector<1x256xf32>
    %194 = vector.broadcast %193 : vector<1x256xf32> to vector<64x256xf32>
    %195 = arith.addf %192, %194 : vector<64x256xf32>
    %c0_44 = arith.constant 0 : index
    %c0_45 = arith.constant 0 : index
    %196 = vector.load %arg11[%c0_44, %c0_45] : memref<64x256xf32, #tpu.memory_space<vmem>>, vector<64x256xf32>
    tpu.vector_store %arg11[%c0_44, %c0_45], %195 {strides = array<i32>} : memref<64x256xf32, #tpu.memory_space<vmem>>, vector<64x256xf32>,
    %c0_46 = arith.constant 0 : index
    %c0_47 = arith.constant 0 : index
    %197 = vector.load %arg6[%c0_46, %c0_47] : memref<64x256xf32, #tpu.memory_space<vmem>>, vector<64x256xf32>
    %cst_48 = arith.constant 0.000000e+00 : f32
    %198 = vector.broadcast %cst_48 : f32 to vector<8x64xf32>
    %cst_49 = arith.constant 0.000000e+00 : f32
    %199 = vector.broadcast %cst_49 : f32 to vector<8x64xf32>
    %c0_50 = arith.constant 0 : index
    %c0_51 = arith.constant 0 : index
    %200 = vector.load %arg11[%c0_50, %c0_51] : memref<64x256xf32, #tpu.memory_space<vmem>>, vector<8x256xf32>
    %cst_52 = arith.constant dense<0.000000e+00> : vector<8x256xf32>
    %201 = tpu.matmul %198, %197, %cst_52 {dimension_numbers = #tpu.dot_dimension_numbers<[1], [0], [0], [1], [0, 0, 1, 1], [], []>} : vector<8x64xf32>, vector<64x256xf32>, vector<8x256xf32> -> vector<8x256xf32>
    %202 = arith.addf %200, %201 : vector<8x256xf32>
    %203 = vector.extract_strided_slice %202 {offsets = [0, 0], sizes = [8, 192], strides = [1, 1]} : vector<8x256xf32> to vector<8x192xf32>
    %204 = arith.negf %203 : vector<8x192xf32>
    %205 = math.exp %204 : vector<8x192xf32>
    %cst_53 = arith.constant 1.000000e+00 : f32
    %206 = vector.broadcast %cst_53 : f32 to vector<8x192xf32>
    %207 = arith.addf %206, %205 : vector<8x192xf32>
    %208 = arith.divf %206, %207 : vector<8x192xf32>
    %209 = vector.extract_strided_slice %202 {offsets = [0, 192], sizes = [8, 64], strides = [1, 1]} : vector<8x256xf32> to vector<8x64xf32>
    %210 = math.tanh %209 : vector<8x64xf32>
    %211 = vector.extract_strided_slice %208 {offsets = [0, 0], sizes = [8, 64], strides = [1, 1]} : vector<8x192xf32> to vector<8x64xf32>
    %212 = vector.extract_strided_slice %208 {offsets = [0, 64], sizes = [8, 64], strides = [1, 1]} : vector<8x192xf32> to vector<8x64xf32>
    %213 = vector.extract_strided_slice %208 {offsets = [0, 128], sizes = [8, 64], strides = [1, 1]} : vector<8x192xf32> to vector<8x64xf32>
    %214 = arith.mulf %211, %199 : vector<8x64xf32>
    %215 = arith.mulf %212, %210 : vector<8x64xf32>
    %216 = arith.addf %214, %215 : vector<8x64xf32>
    %217 = math.tanh %216 : vector<8x64xf32>
    %218 = arith.mulf %213, %217 : vector<8x64xf32>
    %c8_54 = arith.constant 8 : index
    %c0_55 = arith.constant 0 : index
    %219 = vector.load %arg11[%c8_54, %c0_55] : memref<64x256xf32, #tpu.memory_space<vmem>>, vector<8x256xf32>
    %cst_56 = arith.constant dense<0.000000e+00> : vector<8x256xf32>
    %220 = tpu.matmul %218, %197, %cst_56 {dimension_numbers = #tpu.dot_dimension_numbers<[1], [0], [0], [1], [0, 0, 1, 1], [], []>} : vector<8x64xf32>, vector<64x256xf32>, vector<8x256xf32> -> vector<8x256xf32>
    %221 = arith.addf %219, %220 : vector<8x256xf32>
    %222 = vector.extract_strided_slice %221 {offsets = [0, 0], sizes = [8, 192], strides = [1, 1]} : vector<8x256xf32> to vector<8x192xf32>
    %223 = arith.negf %222 : vector<8x192xf32>
    %224 = math.exp %223 : vector<8x192xf32>
    %cst_57 = arith.constant 1.000000e+00 : f32
    %225 = vector.broadcast %cst_57 : f32 to vector<8x192xf32>
    %226 = arith.addf %225, %224 : vector<8x192xf32>
    %227 = arith.divf %225, %226 : vector<8x192xf32>
    %228 = vector.extract_strided_slice %221 {offsets = [0, 192], sizes = [8, 64], strides = [1, 1]} : vector<8x256xf32> to vector<8x64xf32>
    %229 = math.tanh %228 : vector<8x64xf32>
    %230 = vector.extract_strided_slice %227 {offsets = [0, 0], sizes = [8, 64], strides = [1, 1]} : vector<8x192xf32> to vector<8x64xf32>
    %231 = vector.extract_strided_slice %227 {offsets = [0, 64], sizes = [8, 64], strides = [1, 1]} : vector<8x192xf32> to vector<8x64xf32>
    %232 = vector.extract_strided_slice %227 {offsets = [0, 128], sizes = [8, 64], strides = [1, 1]} : vector<8x192xf32> to vector<8x64xf32>
    %233 = arith.mulf %230, %216 : vector<8x64xf32>
    %234 = arith.mulf %231, %229 : vector<8x64xf32>
    %235 = arith.addf %233, %234 : vector<8x64xf32>
    %236 = math.tanh %235 : vector<8x64xf32>
    %237 = arith.mulf %232, %236 : vector<8x64xf32>
    %c16_58 = arith.constant 16 : index
    %c0_59 = arith.constant 0 : index
    %238 = vector.load %arg11[%c16_58, %c0_59] : memref<64x256xf32, #tpu.memory_space<vmem>>, vector<8x256xf32>
    %cst_60 = arith.constant dense<0.000000e+00> : vector<8x256xf32>
    %239 = tpu.matmul %237, %197, %cst_60 {dimension_numbers = #tpu.dot_dimension_numbers<[1], [0], [0], [1], [0, 0, 1, 1], [], []>} : vector<8x64xf32>, vector<64x256xf32>, vector<8x256xf32> -> vector<8x256xf32>
    %240 = arith.addf %238, %239 : vector<8x256xf32>
    %241 = vector.extract_strided_slice %240 {offsets = [0, 0], sizes = [8, 192], strides = [1, 1]} : vector<8x256xf32> to vector<8x192xf32>
    %242 = arith.negf %241 : vector<8x192xf32>
    %243 = math.exp %242 : vector<8x192xf32>
    %cst_61 = arith.constant 1.000000e+00 : f32
    %244 = vector.broadcast %cst_61 : f32 to vector<8x192xf32>
    %245 = arith.addf %244, %243 : vector<8x192xf32>
    %246 = arith.divf %244, %245 : vector<8x192xf32>
    %247 = vector.extract_strided_slice %240 {offsets = [0, 192], sizes = [8, 64], strides = [1, 1]} : vector<8x256xf32> to vector<8x64xf32>
    %248 = math.tanh %247 : vector<8x64xf32>
    %249 = vector.extract_strided_slice %246 {offsets = [0, 0], sizes = [8, 64], strides = [1, 1]} : vector<8x192xf32> to vector<8x64xf32>
    %250 = vector.extract_strided_slice %246 {offsets = [0, 64], sizes = [8, 64], strides = [1, 1]} : vector<8x192xf32> to vector<8x64xf32>
    %251 = vector.extract_strided_slice %246 {offsets = [0, 128], sizes = [8, 64], strides = [1, 1]} : vector<8x192xf32> to vector<8x64xf32>
    %252 = arith.mulf %249, %235 : vector<8x64xf32>
    %253 = arith.mulf %250, %248 : vector<8x64xf32>
    %254 = arith.addf %252, %253 : vector<8x64xf32>
    %255 = math.tanh %254 : vector<8x64xf32>
    %256 = arith.mulf %251, %255 : vector<8x64xf32>
    %c24_62 = arith.constant 24 : index
    %c0_63 = arith.constant 0 : index
    %257 = vector.load %arg11[%c24_62, %c0_63] : memref<64x256xf32, #tpu.memory_space<vmem>>, vector<8x256xf32>
    %cst_64 = arith.constant dense<0.000000e+00> : vector<8x256xf32>
    %258 = tpu.matmul %256, %197, %cst_64 {dimension_numbers = #tpu.dot_dimension_numbers<[1], [0], [0], [1], [0, 0, 1, 1], [], []>} : vector<8x64xf32>, vector<64x256xf32>, vector<8x256xf32> -> vector<8x256xf32>
    %259 = arith.addf %257, %258 : vector<8x256xf32>
    %260 = vector.extract_strided_slice %259 {offsets = [0, 0], sizes = [8, 192], strides = [1, 1]} : vector<8x256xf32> to vector<8x192xf32>
    %261 = arith.negf %260 : vector<8x192xf32>
    %262 = math.exp %261 : vector<8x192xf32>
    %cst_65 = arith.constant 1.000000e+00 : f32
    %263 = vector.broadcast %cst_65 : f32 to vector<8x192xf32>
    %264 = arith.addf %263, %262 : vector<8x192xf32>
    %265 = arith.divf %263, %264 : vector<8x192xf32>
    %266 = vector.extract_strided_slice %259 {offsets = [0, 192], sizes = [8, 64], strides = [1, 1]} : vector<8x256xf32> to vector<8x64xf32>
    %267 = math.tanh %266 : vector<8x64xf32>
    %268 = vector.extract_strided_slice %265 {offsets = [0, 0], sizes = [8, 64], strides = [1, 1]} : vector<8x192xf32> to vector<8x64xf32>
    %269 = vector.extract_strided_slice %265 {offsets = [0, 64], sizes = [8, 64], strides = [1, 1]} : vector<8x192xf32> to vector<8x64xf32>
    %270 = vector.extract_strided_slice %265 {offsets = [0, 128], sizes = [8, 64], strides = [1, 1]} : vector<8x192xf32> to vector<8x64xf32>
    %271 = arith.mulf %268, %254 : vector<8x64xf32>
    %272 = arith.mulf %269, %267 : vector<8x64xf32>
    %273 = arith.addf %271, %272 : vector<8x64xf32>
    %274 = math.tanh %273 : vector<8x64xf32>
    %275 = arith.mulf %270, %274 : vector<8x64xf32>
    %c32_66 = arith.constant 32 : index
    %c0_67 = arith.constant 0 : index
    %276 = vector.load %arg11[%c32_66, %c0_67] : memref<64x256xf32, #tpu.memory_space<vmem>>, vector<8x256xf32>
    %cst_68 = arith.constant dense<0.000000e+00> : vector<8x256xf32>
    %277 = tpu.matmul %275, %197, %cst_68 {dimension_numbers = #tpu.dot_dimension_numbers<[1], [0], [0], [1], [0, 0, 1, 1], [], []>} : vector<8x64xf32>, vector<64x256xf32>, vector<8x256xf32> -> vector<8x256xf32>
    %278 = arith.addf %276, %277 : vector<8x256xf32>
    %279 = vector.extract_strided_slice %278 {offsets = [0, 0], sizes = [8, 192], strides = [1, 1]} : vector<8x256xf32> to vector<8x192xf32>
    %280 = arith.negf %279 : vector<8x192xf32>
    %281 = math.exp %280 : vector<8x192xf32>
    %cst_69 = arith.constant 1.000000e+00 : f32
    %282 = vector.broadcast %cst_69 : f32 to vector<8x192xf32>
    %283 = arith.addf %282, %281 : vector<8x192xf32>
    %284 = arith.divf %282, %283 : vector<8x192xf32>
    %285 = vector.extract_strided_slice %278 {offsets = [0, 192], sizes = [8, 64], strides = [1, 1]} : vector<8x256xf32> to vector<8x64xf32>
    %286 = math.tanh %285 : vector<8x64xf32>
    %287 = vector.extract_strided_slice %284 {offsets = [0, 0], sizes = [8, 64], strides = [1, 1]} : vector<8x192xf32> to vector<8x64xf32>
    %288 = vector.extract_strided_slice %284 {offsets = [0, 64], sizes = [8, 64], strides = [1, 1]} : vector<8x192xf32> to vector<8x64xf32>
    %289 = vector.extract_strided_slice %284 {offsets = [0, 128], sizes = [8, 64], strides = [1, 1]} : vector<8x192xf32> to vector<8x64xf32>
    %290 = arith.mulf %287, %273 : vector<8x64xf32>
    %291 = arith.mulf %288, %286 : vector<8x64xf32>
    %292 = arith.addf %290, %291 : vector<8x64xf32>
    %293 = math.tanh %292 : vector<8x64xf32>
    %294 = arith.mulf %289, %293 : vector<8x64xf32>
    %c40_70 = arith.constant 40 : index
    %c0_71 = arith.constant 0 : index
    %295 = vector.load %arg11[%c40_70, %c0_71] : memref<64x256xf32, #tpu.memory_space<vmem>>, vector<8x256xf32>
    %cst_72 = arith.constant dense<0.000000e+00> : vector<8x256xf32>
    %296 = tpu.matmul %294, %197, %cst_72 {dimension_numbers = #tpu.dot_dimension_numbers<[1], [0], [0], [1], [0, 0, 1, 1], [], []>} : vector<8x64xf32>, vector<64x256xf32>, vector<8x256xf32> -> vector<8x256xf32>
    %297 = arith.addf %295, %296 : vector<8x256xf32>
    %298 = vector.extract_strided_slice %297 {offsets = [0, 0], sizes = [8, 192], strides = [1, 1]} : vector<8x256xf32> to vector<8x192xf32>
    %299 = arith.negf %298 : vector<8x192xf32>
    %300 = math.exp %299 : vector<8x192xf32>
    %cst_73 = arith.constant 1.000000e+00 : f32
    %301 = vector.broadcast %cst_73 : f32 to vector<8x192xf32>
    %302 = arith.addf %301, %300 : vector<8x192xf32>
    %303 = arith.divf %301, %302 : vector<8x192xf32>
    %304 = vector.extract_strided_slice %297 {offsets = [0, 192], sizes = [8, 64], strides = [1, 1]} : vector<8x256xf32> to vector<8x64xf32>
    %305 = math.tanh %304 : vector<8x64xf32>
    %306 = vector.extract_strided_slice %303 {offsets = [0, 0], sizes = [8, 64], strides = [1, 1]} : vector<8x192xf32> to vector<8x64xf32>
    %307 = vector.extract_strided_slice %303 {offsets = [0, 64], sizes = [8, 64], strides = [1, 1]} : vector<8x192xf32> to vector<8x64xf32>
    %308 = vector.extract_strided_slice %303 {offsets = [0, 128], sizes = [8, 64], strides = [1, 1]} : vector<8x192xf32> to vector<8x64xf32>
    %309 = arith.mulf %306, %292 : vector<8x64xf32>
    %310 = arith.mulf %307, %305 : vector<8x64xf32>
    %311 = arith.addf %309, %310 : vector<8x64xf32>
    %312 = math.tanh %311 : vector<8x64xf32>
    %313 = arith.mulf %308, %312 : vector<8x64xf32>
    %c48_74 = arith.constant 48 : index
    %c0_75 = arith.constant 0 : index
    %314 = vector.load %arg11[%c48_74, %c0_75] : memref<64x256xf32, #tpu.memory_space<vmem>>, vector<8x256xf32>
    %cst_76 = arith.constant dense<0.000000e+00> : vector<8x256xf32>
    %315 = tpu.matmul %313, %197, %cst_76 {dimension_numbers = #tpu.dot_dimension_numbers<[1], [0], [0], [1], [0, 0, 1, 1], [], []>} : vector<8x64xf32>, vector<64x256xf32>, vector<8x256xf32> -> vector<8x256xf32>
    %316 = arith.addf %314, %315 : vector<8x256xf32>
    %317 = vector.extract_strided_slice %316 {offsets = [0, 0], sizes = [8, 192], strides = [1, 1]} : vector<8x256xf32> to vector<8x192xf32>
    %318 = arith.negf %317 : vector<8x192xf32>
    %319 = math.exp %318 : vector<8x192xf32>
    %cst_77 = arith.constant 1.000000e+00 : f32
    %320 = vector.broadcast %cst_77 : f32 to vector<8x192xf32>
    %321 = arith.addf %320, %319 : vector<8x192xf32>
    %322 = arith.divf %320, %321 : vector<8x192xf32>
    %323 = vector.extract_strided_slice %316 {offsets = [0, 192], sizes = [8, 64], strides = [1, 1]} : vector<8x256xf32> to vector<8x64xf32>
    %324 = math.tanh %323 : vector<8x64xf32>
    %325 = vector.extract_strided_slice %322 {offsets = [0, 0], sizes = [8, 64], strides = [1, 1]} : vector<8x192xf32> to vector<8x64xf32>
    %326 = vector.extract_strided_slice %322 {offsets = [0, 64], sizes = [8, 64], strides = [1, 1]} : vector<8x192xf32> to vector<8x64xf32>
    %327 = vector.extract_strided_slice %322 {offsets = [0, 128], sizes = [8, 64], strides = [1, 1]} : vector<8x192xf32> to vector<8x64xf32>
    %328 = arith.mulf %325, %311 : vector<8x64xf32>
    %329 = arith.mulf %326, %324 : vector<8x64xf32>
    %330 = arith.addf %328, %329 : vector<8x64xf32>
    %331 = math.tanh %330 : vector<8x64xf32>
    %332 = arith.mulf %327, %331 : vector<8x64xf32>
    %c56_78 = arith.constant 56 : index
    %c0_79 = arith.constant 0 : index
    %333 = vector.load %arg11[%c56_78, %c0_79] : memref<64x256xf32, #tpu.memory_space<vmem>>, vector<8x256xf32>
    %cst_80 = arith.constant dense<0.000000e+00> : vector<8x256xf32>
    %334 = tpu.matmul %332, %197, %cst_80 {dimension_numbers = #tpu.dot_dimension_numbers<[1], [0], [0], [1], [0, 0, 1, 1], [], []>} : vector<8x64xf32>, vector<64x256xf32>, vector<8x256xf32> -> vector<8x256xf32>
    %335 = arith.addf %333, %334 : vector<8x256xf32>
    %336 = vector.extract_strided_slice %335 {offsets = [0, 0], sizes = [8, 192], strides = [1, 1]} : vector<8x256xf32> to vector<8x192xf32>
    %337 = arith.negf %336 : vector<8x192xf32>
    %338 = math.exp %337 : vector<8x192xf32>
    %cst_81 = arith.constant 1.000000e+00 : f32
    %339 = vector.broadcast %cst_81 : f32 to vector<8x192xf32>
    %340 = arith.addf %339, %338 : vector<8x192xf32>
    %341 = arith.divf %339, %340 : vector<8x192xf32>
    %342 = vector.extract_strided_slice %335 {offsets = [0, 192], sizes = [8, 64], strides = [1, 1]} : vector<8x256xf32> to vector<8x64xf32>
    %343 = math.tanh %342 : vector<8x64xf32>
    %344 = vector.extract_strided_slice %341 {offsets = [0, 0], sizes = [8, 64], strides = [1, 1]} : vector<8x192xf32> to vector<8x64xf32>
    %345 = vector.extract_strided_slice %341 {offsets = [0, 64], sizes = [8, 64], strides = [1, 1]} : vector<8x192xf32> to vector<8x64xf32>
    %346 = vector.extract_strided_slice %341 {offsets = [0, 128], sizes = [8, 64], strides = [1, 1]} : vector<8x192xf32> to vector<8x64xf32>
    %347 = arith.mulf %344, %330 : vector<8x64xf32>
    %348 = arith.mulf %345, %343 : vector<8x64xf32>
    %349 = arith.addf %347, %348 : vector<8x64xf32>
    %350 = math.tanh %349 : vector<8x64xf32>
    %351 = arith.mulf %346, %350 : vector<8x64xf32>
    %352 = vector.extract_strided_slice %218 {offsets = [0, 0], sizes = [8, 32], strides = [1, 1]} : vector<8x64xf32> to vector<8x32xf32>
    %353 = vector.extract_strided_slice %351 {offsets = [0, 32], sizes = [8, 32], strides = [1, 1]} : vector<8x64xf32> to vector<8x32xf32>
    %354 = tpu.concatenate %352, %353 in 1 : vector<8x32xf32>, vector<8x32xf32> -> vector<8x64xf32>
    %355 = vector.extract_strided_slice %237 {offsets = [0, 0], sizes = [8, 32], strides = [1, 1]} : vector<8x64xf32> to vector<8x32xf32>
    %356 = vector.extract_strided_slice %332 {offsets = [0, 32], sizes = [8, 32], strides = [1, 1]} : vector<8x64xf32> to vector<8x32xf32>
    %357 = tpu.concatenate %355, %356 in 1 : vector<8x32xf32>, vector<8x32xf32> -> vector<8x64xf32>
    %358 = vector.extract_strided_slice %256 {offsets = [0, 0], sizes = [8, 32], strides = [1, 1]} : vector<8x64xf32> to vector<8x32xf32>
    %359 = vector.extract_strided_slice %313 {offsets = [0, 32], sizes = [8, 32], strides = [1, 1]} : vector<8x64xf32> to vector<8x32xf32>
    %360 = tpu.concatenate %358, %359 in 1 : vector<8x32xf32>, vector<8x32xf32> -> vector<8x64xf32>
    %361 = vector.extract_strided_slice %275 {offsets = [0, 0], sizes = [8, 32], strides = [1, 1]} : vector<8x64xf32> to vector<8x32xf32>
    %362 = vector.extract_strided_slice %294 {offsets = [0, 32], sizes = [8, 32], strides = [1, 1]} : vector<8x64xf32> to vector<8x32xf32>
    %363 = tpu.concatenate %361, %362 in 1 : vector<8x32xf32>, vector<8x32xf32> -> vector<8x64xf32>
    %364 = vector.extract_strided_slice %294 {offsets = [0, 0], sizes = [8, 32], strides = [1, 1]} : vector<8x64xf32> to vector<8x32xf32>
    %365 = vector.extract_strided_slice %275 {offsets = [0, 32], sizes = [8, 32], strides = [1, 1]} : vector<8x64xf32> to vector<8x32xf32>
    %366 = tpu.concatenate %364, %365 in 1 : vector<8x32xf32>, vector<8x32xf32> -> vector<8x64xf32>
    %367 = vector.extract_strided_slice %313 {offsets = [0, 0], sizes = [8, 32], strides = [1, 1]} : vector<8x64xf32> to vector<8x32xf32>
    %368 = vector.extract_strided_slice %256 {offsets = [0, 32], sizes = [8, 32], strides = [1, 1]} : vector<8x64xf32> to vector<8x32xf32>
    %369 = tpu.concatenate %367, %368 in 1 : vector<8x32xf32>, vector<8x32xf32> -> vector<8x64xf32>
    %370 = vector.extract_strided_slice %332 {offsets = [0, 0], sizes = [8, 32], strides = [1, 1]} : vector<8x64xf32> to vector<8x32xf32>
    %371 = vector.extract_strided_slice %237 {offsets = [0, 32], sizes = [8, 32], strides = [1, 1]} : vector<8x64xf32> to vector<8x32xf32>
    %372 = tpu.concatenate %370, %371 in 1 : vector<8x32xf32>, vector<8x32xf32> -> vector<8x64xf32>
    %373 = vector.extract_strided_slice %351 {offsets = [0, 0], sizes = [8, 32], strides = [1, 1]} : vector<8x64xf32> to vector<8x32xf32>
    %374 = vector.extract_strided_slice %218 {offsets = [0, 32], sizes = [8, 32], strides = [1, 1]} : vector<8x64xf32> to vector<8x32xf32>
    %375 = tpu.concatenate %373, %374 in 1 : vector<8x32xf32>, vector<8x32xf32> -> vector<8x64xf32>
    %376 = tpu.concatenate %354, %357, %360, %363, %366, %369, %372, %375 in 0 : vector<8x64xf32>, vector<8x64xf32>, vector<8x64xf32>, vector<8x64xf32>, vector<8x64xf32>, vector<8x64xf32>, vector<8x64xf32>, vector<8x64xf32> -> vector<64x64xf32>
    %c0_82 = arith.constant 0 : index
    %c0_83 = arith.constant 0 : index
    %377 = vector.load %arg8[%c0_82, %c0_83] : memref<64x1xf32, #tpu.memory_space<vmem>>, vector<64x1xf32>
    %cst_84 = arith.constant dense<0.000000e+00> : vector<64x1xf32>
    %378 = tpu.matmul %376, %377, %cst_84 {dimension_numbers = #tpu.dot_dimension_numbers<[1], [0], [0], [1], [0, 0, 1, 1], [], []>} : vector<64x64xf32>, vector<64x1xf32>, vector<64x1xf32> -> vector<64x1xf32>
    %c0_85 = arith.constant 0 : index
    %c0_86 = arith.constant 0 : index
    %379 = vector.load %arg9[%c0_85, %c0_86] : memref<1x1xf32, #tpu.memory_space<vmem>>, vector<1x1xf32>
    %380 = vector.broadcast %379 : vector<1x1xf32> to vector<64x1xf32>
    %381 = arith.addf %378, %380 : vector<64x1xf32>
    %c0_87 = arith.constant 0 : index
    %c0_88 = arith.constant 0 : index
    %382 = vector.load %arg10[%c0_87, %c0_88] : memref<64x1xf32, #tpu.memory_space<vmem>>, vector<64x1xf32>
    tpu.vector_store %arg10[%c0_87, %c0_88], %381 {strides = array<i32>} : memref<64x1xf32, #tpu.memory_space<vmem>>, vector<64x1xf32>,
    return
  }
}

</mosaic_0001>

<bundles_post_ra>
// kernel: bilstm_generator_forward.1
= control target key start
LH: loop header
LB: loop body
LE: loop exit
PB: predicated region body
PF: predicated region fallthrough
CT: control target
= control target key end

     0   :  { %s3702_s0 = inlined_call_operand.vmem [shape: f32[64,16], index: 0, kind: input, shape index: {}]   ;;  %s3703_s1 = inlined_call_operand.hbm [shape: f32[16,256], index: 1, kind: input, shape index: {}]   ;;  %s3704_s2 = inlined_call_operand.vmem [shape: f32[64,256], index: 2, kind: input, shape index: {}]   ;;  %s3705_s3 = inlined_call_operand.vmem [shape: f32[1,256], index: 3, kind: input, shape index: {}]   ;;  %s3706_s4 = inlined_call_operand.vmem [shape: f32[64,256], index: 4, kind: input, shape index: {}]   ;;  %s3707_s5 = inlined_call_operand.vmem [shape: f32[64,256], index: 5, kind: input, shape index: {}]   ;;  %s3708_s6 = inlined_call_operand.vmem [shape: f32[64,256], index: 6, kind: input, shape index: {}]   ;;  %s3709_s7 = inlined_call_operand.vmem [shape: f32[1,256], index: 7, kind: input, shape index: {}]   ;;  %s3710_s8 = inlined_call_operand.hbm [shape: f32[64,1], index: 8, kind: input, shape index: {}]   ;;  %s3711_s9 = inlined_call_operand.<no memory space> [shape: f32[1,1], index: 9, kind: input, shape index: {}]   ;;  %s3712_s10 = inlined_call_operand.vmem [shape: f32[64,1], index: 10, kind: output, shape index: {}]  }
   0x1   :  { %v15_v0 = vstv %s3711_s9 }
   0x2   :  { %16 = vst [vmem:[#allocation3] sm:$0x1] %v15_v0 }
   0x3   :  { %17 = vsyncpa [#allocation5], 0 }
   0x4   :  { %18 = vsyncpa [#allocation7], 0  ;;  %s2746_s15 = smov [#allocation4]  }
   0x5   :  { %s26_s16 = sshll.u32 %s2746_s15, 4  ;;  %s27_s16 = int_to_ptr.vmem [resolvable:$true] %s26_s16 }
   0x6   :  { %s2710_s17 = scalar_lea.vmem %s27_s16, 512  ;;  %p2715_p1 = scmp.lt.s32.totalorder %s27_s16, %s27_s16 }
   0x7   :  { %p2711_p0 = scmp.ne.s32.totalorder %s27_s16, %s2710_s17  ;;  %p2716_p2 = scmp.lt.s32.totalorder %s2710_s17, %s2710_s17 }
   0x9   :  { %p2717_p3 = por %p2716_p2, %p2715_p1 }
   0xb   :  { %p2718_p4 = pnand %p2717_p3, %p2711_p0 }
   0xd   :  { %2721 = shalt.err (!%p2718_p4)
}
   0xe   :  { %s2747_s18 = smov 256   ;;  %s2748_s19 = smov 16  }
   0xf   :  { %32 = dma.hbm_to_vmem [thread:$0]  %s3703_s1, 512, %s27_s16, [#allocation5], %s2747_s18, %s2747_s18, %s2748_s19  }
  0x10   :  { %s2749_s9 = smov [#allocation6]  }
  0x11   :  { %s50_s22 = sshll.u32 %s2749_s9, 4  ;;  %s51_s22 = int_to_ptr.vmem [resolvable:$true] %s50_s22 }
  0x12   :  { %s2730_s23 = scalar_lea.vmem %s51_s22, 1024  ;;  %p2735_p6 = scmp.lt.s32.totalorder %s51_s22, %s51_s22 }
  0x13   :  { %p2731_p5 = scmp.ne.s32.totalorder %s51_s22, %s2730_s23  ;;  %p2736_p7 = scmp.lt.s32.totalorder %s2730_s23, %s2730_s23 }
  0x15   :  { %p2737_p8 = por %p2736_p7, %p2735_p6 }
  0x17   :  { %p2738_p9 = pnand %p2737_p8, %p2731_p5 }
  0x19   :  { %2741 = shalt.err (!%p2738_p9)
}
  0x1a   :  { %s2750_s24 = smov 128   ;;  %s2751_s25 = smov 8  }
  0x1b   :  { %56 = dma.hbm_to_vmem [thread:$0]  %s3710_s8, 1024, %s51_s22, [#allocation7], %s2750_s24, %s2750_s24, %s2751_s25  }
  0x1c   :  { %2742 = dma.done.wait [#allocation5], 512  }
  0x1d   :  { %2743 = vsyncadd [#allocation5], 4294966784 }
  0x1e   :  { %2744 = dma.done.wait [#allocation7], 1024  }
  0x1f   :  { %2745 = vsyncadd [#allocation7], 4294966272  ;;  %v2752_v1 = vmov 0.0   ;;  %v76_v2 = vld [vmem:[#allocation4 + $0x18] sm:$0xff]  ;;  %v75_v3 = vld [vmem:[#allocation4 + $0x10] sm:$0xff]  ;;  %vm89_vm0 = vcmask 130048   ;;  %v79_v27 = vlaneseq }
  0x20   :  { %202 = vmatprep.mubr.f32.mxu1 %v2752_v1  ;;  %178 = vmatprep.mubr.f32.mxu0 %v2752_v1  ;;  %v74_v4 = vld [vmem:[#allocation4 + $0x8] sm:$0xff]  ;;  %v73_v5 = vld [vmem:[#allocation4] sm:$0xff]  ;;  %v2826_v7 = vld [vmem:[%s3704_s2 + $0x78] sm:$0xff]  ;;  %s2753_s26 = smov 64   ;;  %vm261_vm1 = vcmask 523264   ;;  %vm1060_vm2 = vcmask 261120  }
  0x21   :  { %2498 = vmatprep.subr.mxu1 %v76_v2  ;;  %142 = vmatprep.subr.mxu0 %v76_v2  ;;  %v69_v6 = vld [vmem:[%s3702_s0 + $0x20] sm:$0xff]  ;;  %v2831_v8 = vld [vmem:[%s3704_s2 + $0x70] sm:$0xff]  ;;  %v2836_v9 = vld [vmem:[%s3704_s2 + $0x68] sm:$0xff]  ;;  %v2981_v30 = vshrl.u32 %v79_v27, 7  ;;  %vm2360_vm3 = vcmask 7168  }
  0x22   :  { %2500 = vmatpush1.msra.mxu1 %v75_v3  ;;  %143 = vmatpush1.msra.mxu0 %v75_v3  ;;  %v2843_v10 = vld [vmem:[%s3704_s2 + $0x60] sm:$0xff]  ;;  %v70_v11 = vld [vmem:[%s3702_s0 + $0x28] sm:$0xff]  ;;  %v2853_v12 = vld [vmem:[%s3704_s2 + $0x58] sm:$0xff] }
  0x23   :  { %2499 = vmatprep.subr.mxu1 %v74_v4  ;;  %144 = vmatprep.subr.mxu0 %v74_v4  ;;  %v2859_v13 = vld [vmem:[%s3704_s2 + $0x50] sm:$0xff]  ;;  %v65_v14 = vld [vmem:[%s3702_s0] sm:$0xff]  ;;  %v2869_v15 = vld [vmem:[%s3704_s2 + $0x48] sm:$0xff]  ;;  %v81_v33 = vsub.s32 0, %v2981_v30  ;;  %v85_v45 = vsub.s32 1, %v2981_v30 }
  0x24   :  { %2501 = vmatpush1.msra.mxu1 %v73_v5  ;;  %145 = vmatpush1.msra.mxu0 %v73_v5  ;;  %v2877_v16 = vld [vmem:[%s3704_s2 + $0x40] sm:$0xff]  ;;  %v71_v17 = vld [vmem:[%s3702_s0 + $0x30] sm:$0xff]  ;;  %v2887_v18 = vld [vmem:[%s3704_s2 + $0x38] sm:$0xff] }
  0x25   :  { %2379 = vmatmul.mubr.msk.f32.vlgmr.msra.gmra.mxu1 %vm89_vm0, %v69_v6  ;;  %281 = vmatprep.subr.mxu1 %v2826_v7  ;;  %v2893_v19 = vld [vmem:[%s3704_s2 + $0x30] sm:$0xff]  ;;  %v2900_v20 = vld [vmem:[%s3704_s2 + $0x28] sm:$0xff]  ;;  %v2908_v21 = vld [vmem:[%s3704_s2 + $0x20] sm:$0xff] }
  0x26   :  { %282 = vmatpush1.msra.mxu1 %v2831_v8  ;;  %208 = vmatprep.mubr.f32.mxu1 %v2752_v1  ;;  %v72_v22 = vld [vmem:[%s3702_s0 + $0x38] sm:$0xff]  ;;  %v2924_v24 = vld [vmem:[%s3704_s2 + $0x10] sm:$0xff]  ;;  %v2931_v25 = vld [vmem:[%s3704_s2 + $0x8] sm:$0xff] }
  0x27   :  { %283 = vmatprep.subr.mxu1 %v2836_v9  ;;  %481 = vmatprep.subr.mxu0 %v2826_v7  ;;  %v2918_v23 = vld [vmem:[%s3704_s2 + $0x18] sm:$0xff]  ;;  %v2939_v26 = vld [vmem:[%s3704_s2] sm:$0xff]  ;;  %v66_v53 = vld [vmem:[%s3702_s0 + $0x8] sm:$0xff] }
  0x28   :  { %284 = vmatpush1.msra.mxu1 %v2843_v10  ;;  %2375 = vmatmul.mubr.msk.f32.vlgmr.msra.gmra.mxu0 %vm89_vm0, %v65_v14  ;;  %v77_v34 = vld [vmem:[%s3705_s3] sm:$0x3] }
  0x29   :  { %2380 = vmatmul.mubr.msk.f32.gmra.mxu1 %vm89_vm0, %v70_v11  ;;  %285 = vmatprep.subr.mxu1 %v2853_v12  ;;  %v2997_v37 = vrot.slane %v77_v34, %v81_v33  ;;  %v3007_v47 = vrot.slane %v77_v34, %v85_v45 }
  0x2a   :  { %286 = vmatpush1.msra.mxu1 %v2859_v13  ;;  %214 = vmatprep.mubr.f32.mxu1 %v2752_v1 }
  0x2b   :  { %287 = vmatprep.subr.mxu1 %v2869_v15  ;;  %184 = vmatprep.mubr.f32.mxu0 %v2752_v1 }
  0x2c   :  { %288 = vmatpush1.msra.mxu1 %v2877_v16  ;;  %482 = vmatpush1.msra.mxu0 %v2831_v8 }
  0x2d   :  { %2381 = vmatmul.mubr.msk.f32.gmra.mxu1 %vm89_vm0, %v71_v17  ;;  %289 = vmatprep.subr.mxu1 %v2887_v18 }
  0x2e   :  { %290 = vmatpush1.msra.mxu1 %v2893_v19  ;;  %220 = vmatprep.mubr.f32.mxu1 %v2752_v1 }
  0x2f   :  { %291 = vmatprep.subr.mxu1 %v2900_v20  ;;  %483 = vmatprep.subr.mxu0 %v2836_v9 }
  0x30   :  { %292 = vmatpush1.msra.mxu1 %v2908_v21  ;;  %484 = vmatpush1.msra.mxu0 %v2843_v10 }
  0x31   :  { %2382 = vmatmul.mubr.msk.f32.gmra.mxu1 %vm89_vm0, %v72_v22  ;;  %293 = vmatprep.subr.mxu1 %v2918_v23 }
  0x32   :  { %294 = vmatpush1.msra.mxu1 %v2924_v24  ;;  %329 = vmatprep.mubr.f32.mxu1 %v2752_v1 }
  0x33   :  { %295 = vmatprep.subr.mxu1 %v2931_v25  ;;  %485 = vmatprep.subr.mxu0 %v2853_v12 }
  0x34   :  { %296 = vmatpush1.msra.mxu1 %v2939_v26  ;;  %486 = vmatpush1.msra.mxu0 %v2859_v13 }
  0x35   :  { %330 = vmatmul.mubr.f32.vlgmr.msra.gmra.mxu1 %v2752_v1  ;;  %381 = vmatprep.subr.mxu1 %v2826_v7 }
  0x36   :  { %382 = vmatpush1.msra.mxu1 %v2831_v8  ;;  %429 = vmatprep.mubr.f32.mxu1 %v2752_v1 }
  0x37   :  { %383 = vmatprep.subr.mxu1 %v2836_v9  ;;  %487 = vmatprep.subr.mxu0 %v2869_v15 }
  0x38   :  { %384 = vmatpush1.msra.mxu1 %v2843_v10  ;;  %488 = vmatpush1.msra.mxu0 %v2877_v16 }
  0x39   :  { %385 = vmatprep.subr.mxu1 %v2853_v12  ;;  %489 = vmatprep.subr.mxu0 %v2887_v18 }
  0x3a   :  { %386 = vmatpush1.msra.mxu1 %v2859_v13  ;;  %490 = vmatpush1.msra.mxu0 %v2893_v19 }
  0x3b   :  { %387 = vmatprep.subr.mxu1 %v2869_v15  ;;  %491 = vmatprep.subr.mxu0 %v2900_v20 }
  0x3c   :  { %388 = vmatpush1.msra.mxu1 %v2877_v16  ;;  %492 = vmatpush1.msra.mxu0 %v2908_v21 }
  0x3d   :  { %389 = vmatprep.subr.mxu1 %v2887_v18  ;;  %493 = vmatprep.subr.mxu0 %v2918_v23 }
  0x3e   :  { %390 = vmatpush1.msra.mxu1 %v2893_v19  ;;  %494 = vmatpush1.msra.mxu0 %v2924_v24 }
  0x3f   :  { %391 = vmatprep.subr.mxu1 %v2900_v20  ;;  %495 = vmatprep.subr.mxu0 %v2931_v25 }
  0x40   :  { %392 = vmatpush1.msra.mxu1 %v2908_v21  ;;  %496 = vmatpush1.msra.mxu0 %v2939_v26 }
  0x41   :  { %393 = vmatprep.subr.mxu1 %v2918_v23  ;;  %681 = vmatprep.subr.mxu0 %v2826_v7 }
  0x42   :  { %394 = vmatpush1.msra.mxu1 %v2924_v24  ;;  %2376 = vmatmul.mubr.msk.f32.gmra.mxu0 %vm89_vm0, %v66_v53 }
  0x43   :  { %395 = vmatprep.subr.mxu1 %v2931_v25  ;;  %190 = vmatprep.mubr.f32.mxu0 %v2752_v1 }
  0x44   :  { %396 = vmatpush1.msra.mxu1 %v2939_v26 }
  0x45   :  { %581 = vmatprep.subr.mxu1 %v2826_v7 }
  0xe5   :  { %v2977_v28 = vpop.f32.mrf.mxu1 }
  0xe7   :  { %v2979_v29 = vpop.f32.mrf.mxu1 }
  0xe8   :  { %v180_v39 = vpop.f32.mrf.mxu0 }
  0xe9   :  { %v2983_v31 = vpop.f32.mrf.mxu1  ;;  %v181_v40 = vadd.f32 %v180_v39, %v2997_v37 }
  0xea   :  { %v182_v46 = vpop.f32.mrf.mxu0 }
  0xeb   :  { %v2985_v32 = vpop.f32.mrf.mxu1  ;;  %v183_v49 = vadd.f32 %v182_v46, %v3007_v47  ;;  %v68_v46 = vld [vmem:[%s3702_s0 + $0x18] sm:$0xff] }
  0xed   :  { %v2991_v35 = vpop.f32.mrf.mxu1 }
  0xef   :  { %v2993_v36 = vpop.f32.mrf.mxu1 }
  0xf1   :  { %v2999_v38 = vpop.f32.mrf.mxu1 }
  0xf3   :  { %v3002_v41 = vpop.f32.mrf.mxu1 }
  0xf5   :  { %v331_v42 = vpop.f32.mrf.mxu1 }
  0xf6   :  { %v336_v43 = vadd.f32 %v331_v42, %v181_v40  ;;  %v67_v40 = vld [vmem:[%s3702_s0 + $0x10] sm:$0xff] }
  0xf7   :  { %v333_v48 = vpop.f32.mrf.mxu1  ;;  %2377 = vmatmul.mubr.msk.f32.gmra.mxu0 %vm89_vm0, %v67_v40 }
  0xf8   :  { %v2383_v44 = vmul.f32 -1.442695, %v336_v43  ;;  %v337_v50 = vadd.f32 %v333_v48, %v183_v49  ;;  %196 = vmatprep.mubr.f32.mxu0 %v2752_v1 }
  0xfa   :  { %2510 = vpow2.f32 %v2383_v44  ;;  %v2384_v57 = vmul.f32 -1.442695, %v337_v50 }
  0xfb   :  { %2512 = vtanh.f32 %v337_v50  ;;  %2378 = vmatmul.mubr.msk.f32.gmra.mxu0 %vm89_vm0, %v68_v46 }
  0xfc   :  { %529 = vmatprep.mubr.f32.mxu0 %v2752_v1 }
 0x102   :  { %v186_v3 = vpop.f32.mrf.mxu0 }
 0x103   :  { %v187_v4 = vadd.f32 %v186_v3, %v2997_v37 }
 0x104   :  { %v188_v14 = vpop.f32.mrf.mxu0 }
 0x105   :  { %v189_v22 = vadd.f32 %v188_v14, %v3007_v47 }
 0x107   :  { %v2511_v51 = vpop.eup %2510 }
 0x108   :  { %v344_v52 = vadd.f32 1.0, %v2511_v51  ;;  %v2513_v54 = vpop.eup %2512 }
 0x10a   :  { %2514 = vrcp.f32 %v344_v52 }
 0x10b   :  { %2516 = vpow2.f32 %v2384_v57 }
 0x117   :  { %v2515_v55 = vpop.eup %2514 }
 0x118   :  { %v352_v56 = vmul.f32 %v2515_v55, %v2513_v54  ;;  %v2517_v58 = vpop.eup %2516  ;;  %v351_v60 = vmul.f32 0.0, %v2515_v55 }
 0x119   :  { %v345_v59 = vadd.f32 1.0, %v2517_v58 }
 0x11a   :  { %354 = vrot.lane.b32.xlu0 %v352_v56, %s2753_s26 }
 0x11b   :  { %2518 = vrcp.f32 %v345_v59 }
 0x128   :  { %v2519_v63 = vpop.eup %2518 }
 0x18c   :  { %v355_v61 = vpop.permute.xlu0 %354 }
 0x18d   :  { %v357_v62 = vadd.f32 %v355_v61, %v351_v60 }
 0x18f   :  { %2520 = vtanh.f32 %v357_v62 }
 0x19c   :  { %v2521_v0 = vpop.eup %2520 }
 0x19d   :  { %v3016_v2 = vmul.f32 %v2521_v0, %v2519_v63 }
 0x19f   :  { %2385 = vmatmul.mubr.msk.f32.vlgmr.msra.gmra.mxu1 %vm261_vm1, %v3016_v2 }
 0x1a0   :  { %582 = vmatpush1.msra.mxu1 %v2831_v8  ;;  %629 = vmatprep.mubr.f32.mxu1 %v2752_v1 }
 0x1a1   :  { %583 = vmatprep.subr.mxu1 %v2836_v9 }
 0x1a2   :  { %584 = vmatpush1.msra.mxu1 %v2843_v10 }
 0x1a3   :  { %585 = vmatprep.subr.mxu1 %v2853_v12 }
 0x1a4   :  { %586 = vmatpush1.msra.mxu1 %v2859_v13 }
 0x1a5   :  { %587 = vmatprep.subr.mxu1 %v2869_v15 }
 0x1a6   :  { %588 = vmatpush1.msra.mxu1 %v2877_v16 }
 0x1a7   :  { %589 = vmatprep.subr.mxu1 %v2887_v18 }
 0x1a8   :  { %590 = vmatpush1.msra.mxu1 %v2893_v19 }
 0x1a9   :  { %591 = vmatprep.subr.mxu1 %v2900_v20 }
 0x1aa   :  { %592 = vmatpush1.msra.mxu1 %v2908_v21 }
 0x1ab   :  { %593 = vmatprep.subr.mxu1 %v2918_v23 }
 0x1ac   :  { %594 = vmatpush1.msra.mxu1 %v2924_v24 }
 0x1ad   :  { %595 = vmatprep.subr.mxu1 %v2931_v25 }
 0x1ae   :  { %596 = vmatpush1.msra.mxu1 %v2939_v26 }
 0x1af   :  { %781 = vmatprep.subr.mxu1 %v2826_v7 }
 0x1b7   :  { %v192_v57 = vpop.f32.mrf.mxu0 }
 0x1b8   :  { %v193_v61 = vadd.f32 %v192_v57, %v2997_v37 }
 0x1b9   :  { %v194_v58 = vpop.f32.mrf.mxu0 }
 0x1bb   :  { %v198_v59 = vpop.f32.mrf.mxu0 }
 0x1bd   :  { %v200_v60 = vpop.f32.mrf.mxu0 }
 0x25f   :  { %v431_v5 = vpop.f32.mrf.mxu1 }
 0x260   :  { %v436_v6 = vadd.f32 %v431_v5, %v187_v4  ;;  %v195_v4 = vadd.f32 %v194_v58, %v3007_v47 }
 0x261   :  { %v433_v17 = vpop.f32.mrf.mxu1 }
 0x262   :  { %v2386_v11 = vmul.f32 -1.442695, %v436_v6  ;;  %v437_v27 = vadd.f32 %v433_v17, %v189_v22 }
 0x264   :  { %2522 = vpow2.f32 %v2386_v11  ;;  %v2387_v48 = vmul.f32 -1.442695, %v437_v27 }
 0x265   :  { %2524 = vtanh.f32 %v437_v27 }
 0x271   :  { %v2523_v34 = vpop.eup %2522 }
 0x272   :  { %v444_v39 = vadd.f32 1.0, %v2523_v34  ;;  %v2525_v42 = vpop.eup %2524 }
 0x274   :  { %2526 = vrcp.f32 %v444_v39 }
 0x275   :  { %2528 = vpow2.f32 %v2387_v48 }
 0x281   :  { %v2527_v43 = vpop.eup %2526 }
 0x282   :  { %v452_v44 = vmul.f32 %v2527_v43, %v2525_v42  ;;  %v2529_v49 = vpop.eup %2528  ;;  %v451_v51 = vmul.f32 %v2527_v43, %v357_v62 }
 0x283   :  { %v445_v50 = vadd.f32 1.0, %v2529_v49  ;;  %v199_v49 = vadd.f32 %v198_v59, %v2997_v37 }
 0x284   :  { %454 = vrot.lane.b32.xlu0 %v452_v44, %s2753_s26 }
 0x285   :  { %2530 = vrcp.f32 %v445_v50 }
 0x292   :  { %v2531_v54 = vpop.eup %2530 }
 0x2f6   :  { %v455_v52 = vpop.permute.xlu0 %454 }
 0x2f7   :  { %v457_v53 = vadd.f32 %v455_v52, %v451_v51 }
 0x2f9   :  { %2532 = vtanh.f32 %v457_v53 }
 0x306   :  { %v2533_v55 = vpop.eup %2532 }
 0x307   :  { %v3050_v56 = vmul.f32 %v2533_v55, %v2531_v54  ;;  %v201_v54 = vadd.f32 %v200_v60, %v3007_v47 }
 0x309   :  { %2388 = vmatmul.mubr.msk.f32.vlgmr.msra.gmra.mxu0 %vm261_vm1, %v3050_v56 }
 0x30a   :  { %682 = vmatpush1.msra.mxu0 %v2831_v8  ;;  %729 = vmatprep.mubr.f32.mxu0 %v2752_v1 }
 0x30b   :  { %683 = vmatprep.subr.mxu0 %v2836_v9 }
 0x30c   :  { %684 = vmatpush1.msra.mxu0 %v2843_v10 }
 0x30d   :  { %685 = vmatprep.subr.mxu0 %v2853_v12 }
 0x30e   :  { %686 = vmatpush1.msra.mxu0 %v2859_v13 }
 0x30f   :  { %687 = vmatprep.subr.mxu0 %v2869_v15 }
 0x310   :  { %688 = vmatpush1.msra.mxu0 %v2877_v16 }
 0x311   :  { %689 = vmatprep.subr.mxu0 %v2887_v18 }
 0x312   :  { %690 = vmatpush1.msra.mxu0 %v2893_v19 }
 0x313   :  { %691 = vmatprep.subr.mxu0 %v2900_v20 }
 0x314   :  { %692 = vmatpush1.msra.mxu0 %v2908_v21 }
 0x315   :  { %693 = vmatprep.subr.mxu0 %v2918_v23 }
 0x316   :  { %694 = vmatpush1.msra.mxu0 %v2924_v24 }
 0x317   :  { %695 = vmatprep.subr.mxu0 %v2931_v25 }
 0x318   :  { %696 = vmatpush1.msra.mxu0 %v2939_v26 }
 0x319   :  { %881 = vmatprep.subr.mxu0 %v2826_v7 }
 0x3c9   :  { %v531_v62 = vpop.f32.mrf.mxu0 }
 0x3ca   :  { %v536_v63 = vadd.f32 %v531_v62, %v193_v61 }
 0x3cb   :  { %v533_v3 = vpop.f32.mrf.mxu0 }
 0x3cc   :  { %v2389_v0 = vmul.f32 -1.442695, %v536_v63  ;;  %v537_v5 = vadd.f32 %v533_v3, %v195_v4 }
 0x3ce   :  { %2534 = vpow2.f32 %v2389_v0  ;;  %v2390_v27 = vmul.f32 -1.442695, %v537_v5 }
 0x3cf   :  { %2536 = vtanh.f32 %v537_v5 }
 0x3db   :  { %v2535_v6 = vpop.eup %2534 }
 0x3dc   :  { %v544_v11 = vadd.f32 1.0, %v2535_v6  ;;  %v2537_v14 = vpop.eup %2536 }
 0x3de   :  { %2538 = vrcp.f32 %v544_v11 }
 0x3df   :  { %2540 = vpow2.f32 %v2390_v27 }
 0x3eb   :  { %v2539_v17 = vpop.eup %2538 }
 0x3ec   :  { %v552_v22 = vmul.f32 %v2539_v17, %v2537_v14  ;;  %v2541_v34 = vpop.eup %2540  ;;  %v551_v40 = vmul.f32 %v2539_v17, %v457_v53  ;;  %v205_v14 = vadd.f32 %v2977_v28, %v2997_v37 }
 0x3ed   :  { %v545_v39 = vadd.f32 1.0, %v2541_v34 }
 0x3ee   :  { %554 = vrot.lane.b32.xlu1 %v552_v22, %s2753_s26 }
 0x3ef   :  { %2542 = vrcp.f32 %v545_v39  ;;  %v207_v39 = vadd.f32 %v2979_v29, %v3007_v47 }
 0x3fc   :  { %v2543_v44 = vpop.eup %2542 }
 0x460   :  { %v555_v42 = vpop.permute.xlu1 %554 }
 0x461   :  { %v557_v43 = vadd.f32 %v555_v42, %v551_v40 }
 0x463   :  { %2544 = vtanh.f32 %v557_v43 }
 0x470   :  { %v2545_v46 = vpop.eup %2544 }
 0x471   :  { %v3074_v48 = vmul.f32 %v2545_v46, %v2543_v44 }
 0x473   :  { %2391 = vmatmul.mubr.msk.f32.vlgmr.msra.gmra.mxu1 %vm261_vm1, %v3074_v48 }
 0x474   :  { %782 = vmatpush1.msra.mxu1 %v2831_v8  ;;  %829 = vmatprep.mubr.f32.mxu1 %v2752_v1 }
 0x475   :  { %783 = vmatprep.subr.mxu1 %v2836_v9 }
 0x476   :  { %784 = vmatpush1.msra.mxu1 %v2843_v10 }
 0x477   :  { %785 = vmatprep.subr.mxu1 %v2853_v12 }
 0x478   :  { %786 = vmatpush1.msra.mxu1 %v2859_v13 }
 0x479   :  { %787 = vmatprep.subr.mxu1 %v2869_v15 }
 0x47a   :  { %788 = vmatpush1.msra.mxu1 %v2877_v16 }
 0x47b   :  { %789 = vmatprep.subr.mxu1 %v2887_v18 }
 0x47c   :  { %790 = vmatpush1.msra.mxu1 %v2893_v19 }
 0x47d   :  { %791 = vmatprep.subr.mxu1 %v2900_v20 }
 0x47e   :  { %792 = vmatpush1.msra.mxu1 %v2908_v21 }
 0x47f   :  { %793 = vmatprep.subr.mxu1 %v2918_v23 }
 0x480   :  { %794 = vmatpush1.msra.mxu1 %v2924_v24 }
 0x481   :  { %795 = vmatprep.subr.mxu1 %v2931_v25 }
 0x482   :  { %796 = vmatpush1.msra.mxu1 %v2939_v26 }
 0x483   :  { %981 = vmatprep.subr.mxu1 %v2826_v7 }
 0x533   :  { %v631_v50 = vpop.f32.mrf.mxu1 }
 0x534   :  { %v636_v51 = vadd.f32 %v631_v50, %v199_v49 }
 0x535   :  { %v633_v53 = vpop.f32.mrf.mxu1 }
 0x536   :  { %v2392_v52 = vmul.f32 -1.442695, %v636_v51  ;;  %v637_v55 = vadd.f32 %v633_v53, %v201_v54 }
 0x538   :  { %2546 = vpow2.f32 %v2392_v52  ;;  %v2393_v7 = vmul.f32 -1.442695, %v637_v55 }
 0x539   :  { %2548 = vtanh.f32 %v637_v55 }
 0x545   :  { %v2547_v57 = vpop.eup %2546 }
 0x546   :  { %v644_v58 = vadd.f32 1.0, %v2547_v57  ;;  %v2549_v61 = vpop.eup %2548 }
 0x548   :  { %2550 = vrcp.f32 %v644_v58 }
 0x549   :  { %2552 = vpow2.f32 %v2393_v7  ;;  %v217_v7 = vadd.f32 %v2991_v35, %v2997_v37 }
 0x555   :  { %v2551_v62 = vpop.eup %2550 }
 0x556   :  { %v652_v63 = vmul.f32 %v2551_v62, %v2549_v61  ;;  %v2553_v59 = vpop.eup %2552  ;;  %v651_v3 = vmul.f32 %v2551_v62, %v557_v43 }
 0x557   :  { %v645_v0 = vadd.f32 1.0, %v2553_v59 }
 0x558   :  { %654 = vrot.lane.b32.xlu1 %v652_v63, %s2753_s26 }
 0x559   :  { %2554 = vrcp.f32 %v645_v0 }
 0x566   :  { %v2555_v60 = vpop.eup %2554 }
 0x5ca   :  { %v655_v4 = vpop.permute.xlu1 %654 }
 0x5cb   :  { %v657_v5 = vadd.f32 %v655_v4, %v651_v3 }
 0x5cd   :  { %2556 = vtanh.f32 %v657_v5 }
 0x5da   :  { %v2557_v6 = vpop.eup %2556 }
 0x5db   :  { %v3098_v11 = vmul.f32 %v2557_v6, %v2555_v60 }
 0x5dd   :  { %2394 = vmatmul.mubr.msk.f32.vlgmr.msra.gmra.mxu0 %vm261_vm1, %v3098_v11 }
 0x5de   :  { %882 = vmatpush1.msra.mxu0 %v2831_v8  ;;  %929 = vmatprep.mubr.f32.mxu0 %v2752_v1 }
 0x5df   :  { %883 = vmatprep.subr.mxu0 %v2836_v9 }
 0x5e0   :  { %884 = vmatpush1.msra.mxu0 %v2843_v10 }
 0x5e1   :  { %885 = vmatprep.subr.mxu0 %v2853_v12 }
 0x5e2   :  { %886 = vmatpush1.msra.mxu0 %v2859_v13 }
 0x5e3   :  { %887 = vmatprep.subr.mxu0 %v2869_v15 }
 0x5e4   :  { %888 = vmatpush1.msra.mxu0 %v2877_v16 }
 0x5e5   :  { %889 = vmatprep.subr.mxu0 %v2887_v18 }
 0x5e6   :  { %890 = vmatpush1.msra.mxu0 %v2893_v19 }
 0x5e7   :  { %891 = vmatprep.subr.mxu0 %v2900_v20 }
 0x5e8   :  { %892 = vmatpush1.msra.mxu0 %v2908_v21 }
 0x5e9   :  { %893 = vmatprep.subr.mxu0 %v2918_v23 }
 0x5ea   :  { %894 = vmatpush1.msra.mxu0 %v2924_v24 }
 0x5eb   :  { %895 = vmatprep.subr.mxu0 %v2931_v25 }
 0x5ec   :  { %896 = vmatpush1.msra.mxu0 %v2939_v26 }
 0x69d   :  { %v731_v17 = vpop.f32.mrf.mxu0 }
 0x69e   :  { %v736_v22 = vadd.f32 %v731_v17, %v205_v14 }
 0x69f   :  { %v733_v34 = vpop.f32.mrf.mxu0 }
 0x6a0   :  { %v2395_v27 = vmul.f32 -1.442695, %v736_v22  ;;  %v737_v40 = vadd.f32 %v733_v34, %v207_v39 }
 0x6a2   :  { %2558 = vpow2.f32 %v2395_v27  ;;  %v2396_v50 = vmul.f32 -1.442695, %v737_v40 }
 0x6a3   :  { %2560 = vtanh.f32 %v737_v40 }
 0x6af   :  { %v2559_v42 = vpop.eup %2558 }
 0x6b0   :  { %v744_v43 = vadd.f32 1.0, %v2559_v42  ;;  %v2561_v44 = vpop.eup %2560 }
 0x6b2   :  { %2562 = vrcp.f32 %v744_v43 }
 0x6b3   :  { %2564 = vpow2.f32 %v2396_v50 }
 0x6bf   :  { %v2563_v46 = vpop.eup %2562 }
 0x6c0   :  { %v752_v49 = vmul.f32 %v2563_v46, %v2561_v44  ;;  %v2565_v28 = vpop.eup %2564  ;;  %v751_v52 = vmul.f32 %v2563_v46, %v657_v5  ;;  %v219_v5 = vadd.f32 %v2993_v36, %v3007_v47 }
 0x6c1   :  { %v745_v51 = vadd.f32 1.0, %v2565_v28 }
 0x6c2   :  { %754 = vrot.lane.b32.xlu0 %v752_v49, %s2753_s26  ;;  %v223_v49 = vadd.f32 %v2999_v38, %v2997_v37  ;;  %v1099_v38 = vld [vmem:[%s3707_s5 + $0x70] sm:$0xff] }
 0x6c3   :  { %2566 = vrcp.f32 %v745_v51 }
 0x6d0   :  { %v2567_v29 = vpop.eup %2566 }
 0x734   :  { %v755_v53 = vpop.permute.xlu0 %754 }
 0x735   :  { %v757_v54 = vadd.f32 %v755_v53, %v751_v52  ;;  %v225_v53 = vadd.f32 %v3002_v41, %v3007_v47  ;;  %v1083_v41 = vld [vmem:[%s3706_s4 + $0x70] sm:$0xff] }
 0x737   :  { %2568 = vtanh.f32 %v757_v54 }
 0x744   :  { %v2569_v55 = vpop.eup %2568 }
 0x745   :  { %v3123_v57 = vmul.f32 %v2569_v55, %v2567_v29 }
 0x747   :  { %2397 = vmatmul.mubr.msk.f32.vlgmr.msra.gmra.mxu1 %vm261_vm1, %v3123_v57 }
 0x748   :  { %982 = vmatpush1.msra.mxu1 %v2831_v8  ;;  %1029 = vmatprep.mubr.f32.mxu1 %v2752_v1  ;;  %v211_v8 = vadd.f32 %v2983_v31, %v2997_v37  ;;  %v1084_v37 = vld [vmem:[%s3706_s4 + $0x78] sm:$0xff] }
 0x749   :  { %983 = vmatprep.subr.mxu1 %v2836_v9 }
 0x74a   :  { %984 = vmatpush1.msra.mxu1 %v2843_v10 }
 0x74b   :  { %985 = vmatprep.subr.mxu1 %v2853_v12 }
 0x74c   :  { %986 = vmatpush1.msra.mxu1 %v2859_v13 }
 0x74d   :  { %987 = vmatprep.subr.mxu1 %v2869_v15  ;;  %v213_v15 = vadd.f32 %v2985_v32, %v3007_v47  ;;  %v1098_v47 = vld [vmem:[%s3707_s5 + $0x68] sm:$0xff] }
 0x74e   :  { %988 = vmatpush1.msra.mxu1 %v2877_v16 }
 0x74f   :  { %989 = vmatprep.subr.mxu1 %v2887_v18 }
 0x750   :  { %990 = vmatpush1.msra.mxu1 %v2893_v19 }
 0x751   :  { %991 = vmatprep.subr.mxu1 %v2900_v20 }
 0x752   :  { %992 = vmatpush1.msra.mxu1 %v2908_v21 }
 0x753   :  { %993 = vmatprep.subr.mxu1 %v2918_v23 }
 0x754   :  { %994 = vmatpush1.msra.mxu1 %v2924_v24 }
 0x755   :  { %995 = vmatprep.subr.mxu1 %v2931_v25 }
 0x756   :  { %996 = vmatpush1.msra.mxu1 %v2939_v26 }
 0x757   :  { %1254 = vmatprep.subr.mxu1 %v1084_v37  ;;  %v3352_v37 = vld [vmem:[%s3708_s6 + $0x40] sm:$0xff] }
 0x807   :  { %v831_v9 = vpop.f32.mrf.mxu1 }
 0x808   :  { %v836_v10 = vadd.f32 %v831_v9, %v211_v8  ;;  %v1100_v8 = vld [vmem:[%s3707_s5 + $0x78] sm:$0xff]  ;;  %v1082_v9 = vld [vmem:[%s3706_s4 + $0x68] sm:$0xff] }
 0x809   :  { %v833_v13 = vpop.f32.mrf.mxu1  ;;  %1141 = vmatprep.subr.mxu0 %v1100_v8  ;;  %v3344_v8 = vld [vmem:[%s3708_s6 + $0x48] sm:$0xff] }
 0x80a   :  { %v2398_v12 = vmul.f32 -1.442695, %v836_v10  ;;  %v837_v16 = vadd.f32 %v833_v13, %v213_v15  ;;  %v1097_v10 = vld [vmem:[%s3707_s5 + $0x60] sm:$0xff]  ;;  %v1096_v13 = vld [vmem:[%s3707_s5 + $0x58] sm:$0xff] }
 0x80b   :  { %v1080_v15 = vld [vmem:[%s3706_s4 + $0x58] sm:$0xff] }
 0x80c   :  { %2570 = vpow2.f32 %v2398_v12  ;;  %v2399_v24 = vmul.f32 -1.442695, %v837_v16  ;;  %v1081_v12 = vld [vmem:[%s3706_s4 + $0x60] sm:$0xff] }
 0x80d   :  { %2572 = vtanh.f32 %v837_v16  ;;  %v1095_v16 = vld [vmem:[%s3707_s5 + $0x50] sm:$0xff] }
 0x819   :  { %v2571_v18 = vpop.eup %2570 }
 0x81a   :  { %v844_v19 = vadd.f32 1.0, %v2571_v18  ;;  %v2573_v20 = vpop.eup %2572  ;;  %v1079_v18 = vld [vmem:[%s3706_s4 + $0x50] sm:$0xff] }
 0x81c   :  { %2574 = vrcp.f32 %v844_v19  ;;  %v1094_v19 = vld [vmem:[%s3707_s5 + $0x48] sm:$0xff] }
 0x81d   :  { %2576 = vpow2.f32 %v2399_v24  ;;  %v1092_v24 = vld [vmem:[%s3707_s5 + $0x38] sm:$0xff] }
 0x829   :  { %v2575_v21 = vpop.eup %2574 }
 0x82a   :  { %v852_v23 = vmul.f32 %v2575_v21, %v2573_v20  ;;  %v2577_v25 = vpop.eup %2576  ;;  %v851_v31 = vmul.f32 %v2575_v21, %v757_v54  ;;  %v1078_v20 = vld [vmem:[%s3706_s4 + $0x48] sm:$0xff]  ;;  %v1093_v21 = vld [vmem:[%s3707_s5 + $0x40] sm:$0xff] }
 0x82b   :  { %v845_v26 = vadd.f32 1.0, %v2577_v25  ;;  %v1076_v25 = vld [vmem:[%s3706_s4 + $0x38] sm:$0xff] }
 0x82c   :  { %854 = vrot.lane.b32.xlu1 %v852_v23, %s2753_s26  ;;  %v1077_v23 = vld [vmem:[%s3706_s4 + $0x40] sm:$0xff] }
 0x82d   :  { %2578 = vrcp.f32 %v845_v26 }
 0x83a   :  { %v2579_v32 = vpop.eup %2578 }
 0x89e   :  { %v855_v58 = vpop.permute.xlu1 %854 }
 0x89f   :  { %v857_v61 = vadd.f32 %v855_v58, %v851_v31  ;;  %v1091_v31 = vld [vmem:[%s3707_s5 + $0x30] sm:$0xff] }
 0x8a0   :  { %v1075_v58 = vld [vmem:[%s3706_s4 + $0x30] sm:$0xff] }
 0x8a1   :  { %2580 = vtanh.f32 %v857_v61 }
 0x8ae   :  { %v2581_v62 = vpop.eup %2580 }
 0x8af   :  { %v3148_v63 = vmul.f32 %v2581_v62, %v2579_v32  ;;  %v1090_v32 = vld [vmem:[%s3707_s5 + $0x28] sm:$0xff] }
 0x8b1   :  { %2400 = vmatmul.mubr.msk.f32.vlgmr.msra.gmra.mxu0 %vm261_vm1, %v3148_v63 }
 0x8b2   :  { %1189 = vmatprep.mubr.f32.mxu0 %v2752_v1  ;;  %1142 = vmatpush1.msra.mxu0 %v1099_v38  ;;  %v3368_v38 = vld [vmem:[%s3708_s6 + $0x38] sm:$0xff] }
 0x8b3   :  { %1143 = vmatprep.subr.mxu0 %v1098_v47  ;;  %v3404_v47 = vld [vmem:[%s3708_s6 + $0x18] sm:$0xff] }
 0x8b4   :  { %1144 = vmatpush1.msra.mxu0 %v1097_v10  ;;  %v3422_v10 = vld [vmem:[%s3708_s6 + $0x8] sm:$0xff] }
 0x8b5   :  { %1145 = vmatprep.subr.mxu0 %v1096_v13 }
 0x8b6   :  { %1146 = vmatpush1.msra.mxu0 %v1095_v16 }
 0x8b7   :  { %1147 = vmatprep.subr.mxu0 %v1094_v19  ;;  %v1351_v19 = vld [vmem:[%s3709_s7] sm:$0x3] }
 0x8b8   :  { %1148 = vmatpush1.msra.mxu0 %v1093_v21 }
 0x8b9   :  { %1149 = vmatprep.subr.mxu0 %v1092_v24  ;;  %v1356_v24 = vrot.slane %v1351_v19, %v81_v33 }
 0x8ba   :  { %1150 = vmatpush1.msra.mxu0 %v1091_v31 }
 0x8bb   :  { %1151 = vmatprep.subr.mxu0 %v1090_v32 }
 0x971   :  { %v931_v59 = vpop.f32.mrf.mxu0 }
 0x972   :  { %v936_v0 = vadd.f32 %v931_v59, %v217_v7  ;;  %v1074_v7 = vld [vmem:[%s3706_s4 + $0x28] sm:$0xff]  ;;  %v1089_v59 = vld [vmem:[%s3707_s5 + $0x20] sm:$0xff] }
 0x973   :  { %v933_v4 = vpop.f32.mrf.mxu0  ;;  %1152 = vmatpush1.msra.mxu0 %v1089_v59 }
 0x974   :  { %v2401_v3 = vmul.f32 -1.442695, %v936_v0  ;;  %v937_v60 = vadd.f32 %v933_v4, %v219_v5  ;;  %v1073_v0 = vld [vmem:[%s3706_s4 + $0x20] sm:$0xff]  ;;  %v1072_v4 = vld [vmem:[%s3706_s4 + $0x18] sm:$0xff]  ;;  %v1087_v5 = vld [vmem:[%s3707_s5 + $0x10] sm:$0xff] }
 0x976   :  { %2582 = vpow2.f32 %v2401_v3  ;;  %v2402_v34 = vmul.f32 -1.442695, %v937_v60  ;;  %v1088_v3 = vld [vmem:[%s3707_s5 + $0x18] sm:$0xff] }
 0x977   :  { %2584 = vtanh.f32 %v937_v60  ;;  %v1071_v60 = vld [vmem:[%s3706_s4 + $0x10] sm:$0xff]  ;;  %1153 = vmatprep.subr.mxu0 %v1088_v3 }
 0x978   :  { %1154 = vmatpush1.msra.mxu0 %v1087_v5 }
 0x983   :  { %v2583_v6 = vpop.eup %2582 }
 0x984   :  { %v944_v14 = vadd.f32 1.0, %v2583_v6  ;;  %v2585_v17 = vpop.eup %2584  ;;  %v1086_v6 = vld [vmem:[%s3707_s5 + $0x8] sm:$0xff] }
 0x985   :  { %1155 = vmatprep.subr.mxu0 %v1086_v6 }
 0x986   :  { %2586 = vrcp.f32 %v944_v14  ;;  %v1070_v14 = vld [vmem:[%s3706_s4 + $0x8] sm:$0xff] }
 0x987   :  { %2588 = vpow2.f32 %v2402_v34 }
 0x993   :  { %v2587_v22 = vpop.eup %2586 }
 0x994   :  { %v952_v27 = vmul.f32 %v2587_v22, %v2585_v17  ;;  %v2589_v35 = vpop.eup %2588  ;;  %v951_v40 = vmul.f32 %v2587_v22, %v857_v61  ;;  %v1085_v17 = vld [vmem:[%s3707_s5] sm:$0xff] }
 0x995   :  { %v945_v39 = vadd.f32 1.0, %v2589_v35  ;;  %v1069_v22 = vld [vmem:[%s3706_s4] sm:$0xff]  ;;  %1156 = vmatpush1.msra.mxu0 %v1085_v17 }
 0x996   :  { %954 = vrot.lane.b32.xlu0 %v952_v27, %s2753_s26  ;;  %v3273_v27 = vld [vmem:[%s3708_s6 + $0x78] sm:$0xff] }
 0x997   :  { %2590 = vrcp.f32 %v945_v39  ;;  %1429 = vmatprep.subr.mxu0 %v3273_v27 }
 0x9a4   :  { %v2591_v36 = vpop.eup %2590 }
 0xa08   :  { %v955_v42 = vpop.permute.xlu0 %954 }
 0xa09   :  { %v3158_v43 = vadd.f32 %v955_v42, %v951_v40 }
 0xa0b   :  { %2592 = vtanh.f32 %v3158_v43 }
 0xa18   :  { %v2593_v44 = vpop.eup %2592 }
 0xa19   :  { %v3161_v46 = vmul.f32 %v2593_v44, %v2591_v36 }
 0xa1b   :  { %2403 = vmatmul.mubr.msk.f32.vlgmr.msra.gmra.mxu1 %vm261_vm1, %v3161_v46 }
 0xa1c   :  { %1302 = vmatprep.mubr.f32.mxu1 %v2752_v1  ;;  %1255 = vmatpush1.msra.mxu1 %v1083_v41  ;;  %v3376_v41 = vld [vmem:[%s3708_s6 + $0x30] sm:$0xff] }
 0xa1d   :  { %1256 = vmatprep.subr.mxu1 %v1082_v9  ;;  %v3412_v9 = vld [vmem:[%s3708_s6 + $0x10] sm:$0xff] }
 0xa1e   :  { %1257 = vmatpush1.msra.mxu1 %v1081_v12  ;;  %v3430_v12 = vld [vmem:[%s3708_s6] sm:$0xff] }
 0xa1f   :  { %1258 = vmatprep.subr.mxu1 %v1080_v15 }
 0xa20   :  { %1259 = vmatpush1.msra.mxu1 %v1079_v18 }
 0xa21   :  { %1260 = vmatprep.subr.mxu1 %v1078_v20 }
 0xa22   :  { %1261 = vmatpush1.msra.mxu1 %v1077_v23 }
 0xa23   :  { %1262 = vmatprep.subr.mxu1 %v1076_v25 }
 0xa24   :  { %1263 = vmatpush1.msra.mxu1 %v1075_v58  ;;  %v1360_v58 = vrot.slane %v1351_v19, %v85_v45 }
 0xa25   :  { %1264 = vmatprep.subr.mxu1 %v1074_v7 }
 0xa26   :  { %1265 = vmatpush1.msra.mxu1 %v1073_v0 }
 0xa27   :  { %1266 = vmatprep.subr.mxu1 %v1072_v4 }
 0xa28   :  { %1267 = vmatpush1.msra.mxu1 %v1071_v60 }
 0xa29   :  { %1268 = vmatprep.subr.mxu1 %v1070_v14 }
 0xa2a   :  { %1269 = vmatpush1.msra.mxu1 %v1069_v22 }
 0xa2b   :  { %1529 = vmatprep.subr.mxu1 %v3273_v27 }
 0xadb   :  { %v1031_v50 = vpop.f32.mrf.mxu1 }
 0xadc   :  { %v1036_v28 = vadd.f32 %v1031_v50, %v223_v49 }
 0xadd   :  { %v1033_v52 = vpop.f32.mrf.mxu1 }
 0xade   :  { %v2404_v51 = vmul.f32 -1.442695, %v1036_v28  ;;  %v3170_v54 = vadd.f32 %v1033_v52, %v225_v53  ;;  %v3282_v28 = vld [vmem:[%s3708_s6 + $0x70] sm:$0xff]  ;;  %v3295_v52 = vld [vmem:[%s3708_s6 + $0x68] sm:$0xff]  ;;  %v3304_v53 = vld [vmem:[%s3708_s6 + $0x60] sm:$0xff] }
 0xae0   :  { %2594 = vpow2.f32 %v2404_v51  ;;  %v2405_v34 = vmul.f32 -1.442695, %v3170_v54 }
 0xae1   :  { %2596 = vtanh.f32 %v3170_v54  ;;  %v1062_v54 = vsel %vm1060_vm2, %v3050_v56, %v3161_v46 }
 0xaed   :  { %v2595_v29 = vpop.eup %2594 }
 0xaee   :  { %v1044_v55 = vadd.f32 1.0, %v2595_v29  ;;  %v2597_v26 = vpop.eup %2596  ;;  %v3320_v29 = vld [vmem:[%s3708_s6 + $0x58] sm:$0xff] }
 0xaf0   :  { %2598 = vrcp.f32 %v1044_v55  ;;  %v3328_v55 = vld [vmem:[%s3708_s6 + $0x50] sm:$0xff] }
 0xaf1   :  { %2600 = vpow2.f32 %v2405_v34 }
 0xafd   :  { %v2599_v61 = vpop.eup %2598 }
 0xafe   :  { %v1052_v62 = vmul.f32 %v2599_v61, %v2597_v26  ;;  %v2601_v35 = vpop.eup %2600  ;;  %v1051_v40 = vmul.f32 %v2599_v61, %v3158_v43 }
 0xaff   :  { %v1045_v39 = vadd.f32 1.0, %v2601_v35 }
 0xb00   :  { %1054 = vrot.lane.b32.xlu1 %v1052_v62, %s2753_s26 }
 0xb01   :  { %2602 = vrcp.f32 %v1045_v39 }
 0xb0e   :  { %v2603_v44 = vpop.eup %2602 }
 0xb72   :  { %v1055_v42 = vpop.permute.xlu1 %1054 }
 0xb73   :  { %v1057_v36 = vadd.f32 %v1055_v42, %v1051_v40 }
 0xb75   :  { %2604 = vtanh.f32 %v1057_v36 }
 0xb82   :  { %v2605_v49 = vpop.eup %2604 }
 0xb83   :  { %v1059_v50 = vmul.f32 %v2605_v49, %v2603_v44 }
 0xb85   :  { %v3286_v51 = vsel %vm1060_vm2, %v1059_v50, %v3016_v2  ;;  %v3290_v43 = vsel %vm1060_vm2, %v3016_v2, %v1059_v50  ;;  %v1067_v2 = vsel %vm1060_vm2, %v3161_v46, %v3050_v56  ;;  %v1066_v56 = vsel %vm1060_vm2, %v3148_v63, %v3074_v48 }
 0xb86   :  { %2406 = vmatmul.mubr.msk.f32.vlgmr.msra.gmra.mxu0 %vm261_vm1, %v3286_v51  ;;  %2414 = vmatmul.mubr.msk.f32.vlgmr.msra.gmra.mxu1 %vm261_vm1, %v3290_v43  ;;  %v1063_v46 = vsel %vm1060_vm2, %v3074_v48, %v3148_v63  ;;  %v1065_v48 = vsel %vm1060_vm2, %v3123_v57, %v3098_v11  ;;  %v1064_v63 = vsel %vm1060_vm2, %v3098_v11, %v3123_v57  ;;  %v3386_v11 = vld [vmem:[%s3708_s6 + $0x28] sm:$0xff]  ;;  %v3394_v57 = vld [vmem:[%s3708_s6 + $0x20] sm:$0xff] }
 0xb87   :  { %1430 = vmatpush1.msra.mxu0 %v3282_v28  ;;  %1195 = vmatprep.mubr.f32.mxu0 %v2752_v1 }
 0xb88   :  { %1308 = vmatprep.mubr.f32.mxu1 %v2752_v1  ;;  %1431 = vmatprep.subr.mxu0 %v3295_v52 }
 0xb89   :  { %1432 = vmatpush1.msra.mxu0 %v3304_v53  ;;  %1530 = vmatpush1.msra.mxu1 %v3282_v28 }
 0xb8a   :  { %2407 = vmatmul.mubr.msk.f32.gmra.mxu0 %vm261_vm1, %v1067_v2  ;;  %2415 = vmatmul.mubr.msk.f32.gmra.mxu1 %vm261_vm1, %v1062_v54 }
 0xb8b   :  { %1201 = vmatprep.mubr.f32.mxu0 %v2752_v1  ;;  %1314 = vmatprep.mubr.f32.mxu1 %v2752_v1 }
 0xb8c   :  { %1433 = vmatprep.subr.mxu0 %v3320_v29  ;;  %1531 = vmatprep.subr.mxu1 %v3295_v52 }
 0xb8d   :  { %1434 = vmatpush1.msra.mxu0 %v3328_v55  ;;  %1532 = vmatpush1.msra.mxu1 %v3304_v53 }
 0xb8e   :  { %2408 = vmatmul.mubr.msk.f32.gmra.mxu0 %vm261_vm1, %v1066_v56  ;;  %2416 = vmatmul.mubr.msk.f32.gmra.mxu1 %vm261_vm1, %v1063_v46 }
 0xb8f   :  { %1207 = vmatprep.mubr.f32.mxu0 %v2752_v1  ;;  %1320 = vmatprep.mubr.f32.mxu1 %v2752_v1 }
 0xb90   :  { %1435 = vmatprep.subr.mxu0 %v3344_v8  ;;  %1533 = vmatprep.subr.mxu1 %v3320_v29 }
 0xb91   :  { %1436 = vmatpush1.msra.mxu0 %v3352_v37  ;;  %1534 = vmatpush1.msra.mxu1 %v3328_v55 }
 0xb92   :  { %2409 = vmatmul.mubr.msk.f32.gmra.mxu0 %vm261_vm1, %v1065_v48  ;;  %2417 = vmatmul.mubr.msk.f32.gmra.mxu1 %vm261_vm1, %v1064_v63 }
 0xb93   :  { %1213 = vmatprep.mubr.f32.mxu0 %v2752_v1  ;;  %1326 = vmatprep.mubr.f32.mxu1 %v2752_v1 }
 0xb94   :  { %1437 = vmatprep.subr.mxu0 %v3368_v38  ;;  %1535 = vmatprep.subr.mxu1 %v3344_v8 }
 0xb95   :  { %1438 = vmatpush1.msra.mxu0 %v3376_v41  ;;  %1536 = vmatpush1.msra.mxu1 %v3352_v37 }
 0xb96   :  { %2410 = vmatmul.mubr.msk.f32.gmra.mxu0 %vm261_vm1, %v1064_v63  ;;  %2418 = vmatmul.mubr.msk.f32.gmra.mxu1 %vm261_vm1, %v1065_v48 }
 0xb97   :  { %1219 = vmatprep.mubr.f32.mxu0 %v2752_v1  ;;  %1332 = vmatprep.mubr.f32.mxu1 %v2752_v1 }
 0xb98   :  { %1439 = vmatprep.subr.mxu0 %v3386_v11  ;;  %1537 = vmatprep.subr.mxu1 %v3368_v38 }
 0xb99   :  { %1440 = vmatpush1.msra.mxu0 %v3394_v57  ;;  %1538 = vmatpush1.msra.mxu1 %v3376_v41 }
 0xb9a   :  { %2411 = vmatmul.mubr.msk.f32.gmra.mxu0 %vm261_vm1, %v1063_v46  ;;  %2419 = vmatmul.mubr.msk.f32.gmra.mxu1 %vm261_vm1, %v1066_v56 }
 0xb9b   :  { %1225 = vmatprep.mubr.f32.mxu0 %v2752_v1  ;;  %1338 = vmatprep.mubr.f32.mxu1 %v2752_v1 }
 0xb9c   :  { %1441 = vmatprep.subr.mxu0 %v3404_v47  ;;  %1539 = vmatprep.subr.mxu1 %v3386_v11 }
 0xb9d   :  { %1442 = vmatpush1.msra.mxu0 %v3412_v9  ;;  %1540 = vmatpush1.msra.mxu1 %v3394_v57 }
 0xb9e   :  { %2412 = vmatmul.mubr.msk.f32.gmra.mxu0 %vm261_vm1, %v1062_v54  ;;  %2420 = vmatmul.mubr.msk.f32.gmra.mxu1 %vm261_vm1, %v1067_v2 }
 0xb9f   :  { %1231 = vmatprep.mubr.f32.mxu0 %v2752_v1  ;;  %1344 = vmatprep.mubr.f32.mxu1 %v2752_v1 }
 0xba0   :  { %1443 = vmatprep.subr.mxu0 %v3422_v10  ;;  %1541 = vmatprep.subr.mxu1 %v3404_v47 }
 0xba1   :  { %1444 = vmatpush1.msra.mxu0 %v3430_v12  ;;  %1542 = vmatpush1.msra.mxu1 %v3412_v9 }
 0xba2   :  { %2413 = vmatmul.mubr.msk.f32.gmra.mxu0 %vm261_vm1, %v3290_v43  ;;  %2421 = vmatmul.mubr.msk.f32.gmra.mxu1 %vm261_vm1, %v3286_v51 }
 0xba3   :  { %1477 = vmatprep.mubr.f32.mxu0 %v2752_v1  ;;  %1543 = vmatprep.subr.mxu1 %v3422_v10 }
 0xba4   :  { %1544 = vmatpush1.msra.mxu1 %v3430_v12  ;;  %1577 = vmatprep.mubr.f32.mxu1 %v2752_v1 }
 0xba5   :  { %1629 = vmatprep.subr.mxu0 %v3273_v27  ;;  %1729 = vmatprep.subr.mxu1 %v3273_v27 }
 0xba6   :  { %1478 = vmatmul.mubr.f32.vlgmr.msra.gmra.mxu0 %v2752_v1 }
 0xba7   :  { %1630 = vmatpush1.msra.mxu0 %v3282_v28  ;;  %1677 = vmatprep.mubr.f32.mxu0 %v2752_v1 }
 0xba8   :  { %1631 = vmatprep.subr.mxu0 %v3295_v52 }
 0xba9   :  { %1632 = vmatpush1.msra.mxu0 %v3304_v53 }
 0xbaa   :  { %1633 = vmatprep.subr.mxu0 %v3320_v29 }
 0xbab   :  { %1634 = vmatpush1.msra.mxu0 %v3328_v55 }
 0xbac   :  { %1635 = vmatprep.subr.mxu0 %v3344_v8 }
 0xbad   :  { %1636 = vmatpush1.msra.mxu0 %v3352_v37 }
 0xbae   :  { %1637 = vmatprep.subr.mxu0 %v3368_v38 }
 0xbaf   :  { %1638 = vmatpush1.msra.mxu0 %v3376_v41 }
 0xbb0   :  { %1639 = vmatprep.subr.mxu0 %v3386_v11 }
 0xbb1   :  { %1640 = vmatpush1.msra.mxu0 %v3394_v57 }
 0xbb2   :  { %1641 = vmatprep.subr.mxu0 %v3404_v47 }
 0xbb3   :  { %1642 = vmatpush1.msra.mxu0 %v3412_v9 }
 0xbb4   :  { %1643 = vmatprep.subr.mxu0 %v3422_v10 }
 0xbb5   :  { %1644 = vmatpush1.msra.mxu0 %v3430_v12 }
 0xbb6   :  { %1829 = vmatprep.subr.mxu0 %v3273_v27 }
 0xc46   :  { %v1191_v13 = vpop.f32.mrf.mxu0  ;;  %v1304_v15 = vpop.f32.mrf.mxu1 }
 0xc48   :  { %v3466_v16 = vpop.f32.mrf.mxu0  ;;  %v3468_v18 = vpop.f32.mrf.mxu1 }
 0xc4a   :  { %v1197_v20 = vpop.f32.mrf.mxu0  ;;  %v1310_v21 = vpop.f32.mrf.mxu1 }
 0xc4b   :  { %v1311_v23 = vadd.f32 %v1310_v21, %v1197_v20 }
 0xc4c   :  { %v1199_v25 = vpop.f32.mrf.mxu0  ;;  %v1312_v26 = vpop.f32.mrf.mxu1 }
 0xc4d   :  { %v1313_v31 = vadd.f32 %v1312_v26, %v1199_v25  ;;  %v3477_v61 = vadd.f32 %v1356_v24, %v1311_v23  ;;  %v1305_v26 = vadd.f32 %v1304_v15, %v1191_v13  ;;  %v1307_v13 = vadd.f32 %v3468_v18, %v3466_v16 }
 0xc4e   :  { %v1203_v32 = vpop.f32.mrf.mxu0  ;;  %v1316_v62 = vpop.f32.mrf.mxu1 }
 0xc4f   :  { %v1317_v7 = vadd.f32 %v1316_v62, %v1203_v32  ;;  %v3479_v59 = vadd.f32 %v1360_v58, %v1313_v31 }
 0xc50   :  { %v1205_v0 = vpop.f32.mrf.mxu0  ;;  %v1318_v3 = vpop.f32.mrf.mxu1 }
 0xc51   :  { %v1319_v4 = vadd.f32 %v1318_v3, %v1205_v0  ;;  %v3481_v5 = vadd.f32 %v1356_v24, %v1317_v7 }
 0xc52   :  { %v1209_v60 = vpop.f32.mrf.mxu0  ;;  %v1322_v33 = vpop.f32.mrf.mxu1 }
 0xc53   :  { %v1323_v6 = vadd.f32 %v1322_v33, %v1209_v60  ;;  %v3483_v14 = vadd.f32 %v1360_v58, %v1319_v4 }
 0xc54   :  { %v1211_v17 = vpop.f32.mrf.mxu0  ;;  %v1324_v30 = vpop.f32.mrf.mxu1 }
 0xc55   :  { %v1325_v45 = vadd.f32 %v1324_v30, %v1211_v17  ;;  %v3485_v22 = vadd.f32 %v1356_v24, %v1323_v6  ;;  %v1363_v6 = vadd.f32 %v1356_v24, %v1305_v26 }
 0xc56   :  { %v1215_v34 = vpop.f32.mrf.mxu0  ;;  %v1328_v35 = vpop.f32.mrf.mxu1 }
 0xc57   :  { %v1329_v39 = vadd.f32 %v1328_v35, %v1215_v34  ;;  %v3487_v40 = vadd.f32 %v1360_v58, %v1325_v45 }
 0xc58   :  { %v1217_v42 = vpop.f32.mrf.mxu0  ;;  %v1330_v36 = vpop.f32.mrf.mxu1 }
 0xc59   :  { %v1331_v44 = vadd.f32 %v1330_v36, %v1217_v42  ;;  %v3489_v49 = vadd.f32 %v1356_v24, %v1329_v39  ;;  %v1364_v39 = vadd.f32 %v1360_v58, %v1307_v13 }
 0xc5a   :  { %v1221_v50 = vpop.f32.mrf.mxu0  ;;  %v1334_v51 = vpop.f32.mrf.mxu1 }
 0xc5b   :  { %v1335_v43 = vadd.f32 %v1334_v51, %v1221_v50  ;;  %v3491_v2 = vadd.f32 %v1360_v58, %v1331_v44 }
 0xc5c   :  { %v1223_v54 = vpop.f32.mrf.mxu0  ;;  %v1336_v56 = vpop.f32.mrf.mxu1 }
 0xc5d   :  { %v1337_v46 = vadd.f32 %v1336_v56, %v1223_v54  ;;  %v3493_v48 = vadd.f32 %v1356_v24, %v1335_v43 }
 0xc5e   :  { %v1227_v63 = vpop.f32.mrf.mxu0  ;;  %v1340_v19 = vpop.f32.mrf.mxu1 }
 0xc5f   :  { %v1341_v20 = vadd.f32 %v1340_v19, %v1227_v63  ;;  %v3495_v21 = vadd.f32 %v1360_v58, %v1337_v46 }
 0xc60   :  { %v1229_v23 = vpop.f32.mrf.mxu0  ;;  %v1342_v25 = vpop.f32.mrf.mxu1 }
 0xc61   :  { %v1343_v31 = vadd.f32 %v1342_v25, %v1229_v23  ;;  %v3497_v32 = vadd.f32 %v1356_v24, %v1341_v20 }
 0xc62   :  { %v1233_v62 = vpop.f32.mrf.mxu0  ;;  %v1346_v7 = vpop.f32.mrf.mxu1 }
 0xc63   :  { %v1347_v0 = vadd.f32 %v1346_v7, %v1233_v62  ;;  %v3499_v3 = vadd.f32 %v1360_v58, %v1343_v31 }
 0xc64   :  { %v1235_v4 = vpop.f32.mrf.mxu0  ;;  %v1348_v60 = vpop.f32.mrf.mxu1 }
 0xc65   :  { %v1349_v33 = vadd.f32 %v1348_v60, %v1235_v4  ;;  %v3501_v17 = vadd.f32 %v1356_v24, %v1347_v0 }
 0xc66   :  { %v1479_v30 = vpop.f32.mrf.mxu0 }
 0xc67   :  { %v1484_v45 = vadd.f32 %v1479_v30, %v1363_v6  ;;  %v3503_v34 = vadd.f32 %v1360_v58, %v1349_v33 }
 0xc68   :  { %v1481_v15 = vpop.f32.mrf.mxu0 }
 0xc69   :  { %v2422_v35 = vmul.f32 -1.442695, %v1484_v45  ;;  %v1485_v42 = vadd.f32 %v1481_v15, %v1364_v39 }
 0xc6b   :  { %2606 = vpow2.f32 %v2422_v35  ;;  %v2423_v43 = vmul.f32 -1.442695, %v1485_v42 }
 0xc6c   :  { %2608 = vtanh.f32 %v1485_v42 }
 0xc78   :  { %v2607_v36 = vpop.eup %2606 }
 0xc79   :  { %v1492_v44 = vadd.f32 1.0, %v2607_v36  ;;  %v2609_v50 = vpop.eup %2608 }
 0xc7b   :  { %2610 = vrcp.f32 %v1492_v44 }
 0xc7c   :  { %2612 = vpow2.f32 %v2423_v43 }
 0xc88   :  { %v2611_v51 = vpop.eup %2610 }
 0xc89   :  { %v1500_v24 = vmul.f32 %v2611_v51, %v2609_v50  ;;  %v2613_v54 = vpop.eup %2612  ;;  %v1499_v46 = vmul.f32 0.0, %v2611_v51 }
 0xc8a   :  { %v1493_v56 = vadd.f32 1.0, %v2613_v54 }
 0xc8b   :  { %1502 = vrot.lane.b32.xlu0 %v1500_v24, %s2753_s26 }
 0xc8c   :  { %2614 = vrcp.f32 %v1493_v56 }
 0xc99   :  { %v2615_v16 = vpop.eup %2614 }
 0xcfd   :  { %v1503_v63 = vpop.permute.xlu0 %1502 }
 0xcfe   :  { %v1505_v19 = vadd.f32 %v1503_v63, %v1499_v46 }
 0xd00   :  { %2616 = vtanh.f32 %v1505_v19 }
 0xd0d   :  { %v2617_v18 = vpop.eup %2616 }
 0xd0e   :  { %v3508_v58 = vmul.f32 %v2617_v18, %v2615_v16 }
 0xd10   :  { %2424 = vmatmul.mubr.msk.f32.vlgmr.msra.gmra.mxu1 %vm261_vm1, %v3508_v58 }
 0xd11   :  { %1730 = vmatpush1.msra.mxu1 %v3282_v28  ;;  %1777 = vmatprep.mubr.f32.mxu1 %v2752_v1 }
 0xd12   :  { %1731 = vmatprep.subr.mxu1 %v3295_v52 }
 0xd13   :  { %1732 = vmatpush1.msra.mxu1 %v3304_v53 }
 0xd14   :  { %1733 = vmatprep.subr.mxu1 %v3320_v29 }
 0xd15   :  { %1734 = vmatpush1.msra.mxu1 %v3328_v55 }
 0xd16   :  { %1735 = vmatprep.subr.mxu1 %v3344_v8 }
 0xd17   :  { %1736 = vmatpush1.msra.mxu1 %v3352_v37 }
 0xd18   :  { %1737 = vmatprep.subr.mxu1 %v3368_v38 }
 0xd19   :  { %1738 = vmatpush1.msra.mxu1 %v3376_v41 }
 0xd1a   :  { %1739 = vmatprep.subr.mxu1 %v3386_v11 }
 0xd1b   :  { %1740 = vmatpush1.msra.mxu1 %v3394_v57 }
 0xd1c   :  { %1741 = vmatprep.subr.mxu1 %v3404_v47 }
 0xd1d   :  { %1742 = vmatpush1.msra.mxu1 %v3412_v9 }
 0xd1e   :  { %1743 = vmatprep.subr.mxu1 %v3422_v10 }
 0xd1f   :  { %1744 = vmatpush1.msra.mxu1 %v3430_v12 }
 0xd20   :  { %1929 = vmatprep.subr.mxu1 %v3273_v27 }
 0xdd0   :  { %v1579_v20 = vpop.f32.mrf.mxu1 }
 0xdd1   :  { %v1584_v23 = vadd.f32 %v1579_v20, %v3477_v61 }
 0xdd2   :  { %v1581_v26 = vpop.f32.mrf.mxu1 }
 0xdd3   :  { %v2425_v25 = vmul.f32 -1.442695, %v1584_v23  ;;  %v1585_v31 = vadd.f32 %v1581_v26, %v3479_v59 }
 0xdd5   :  { %2618 = vpow2.f32 %v2425_v25  ;;  %v2426_v33 = vmul.f32 -1.442695, %v1585_v31 }
 0xdd6   :  { %2620 = vtanh.f32 %v1585_v31 }
 0xde2   :  { %v2619_v62 = vpop.eup %2618 }
 0xde3   :  { %v1592_v7 = vadd.f32 1.0, %v2619_v62  ;;  %v2621_v0 = vpop.eup %2620 }
 0xde5   :  { %2622 = vrcp.f32 %v1592_v7 }
 0xde6   :  { %2624 = vpow2.f32 %v2426_v33 }
 0xdf2   :  { %v2623_v4 = vpop.eup %2622 }
 0xdf3   :  { %v1600_v60 = vmul.f32 %v2623_v4, %v2621_v0  ;;  %v2625_v6 = vpop.eup %2624  ;;  %v1599_v45 = vmul.f32 %v2623_v4, %v1505_v19 }
 0xdf4   :  { %v1593_v30 = vadd.f32 1.0, %v2625_v6 }
 0xdf5   :  { %1602 = vrot.lane.b32.xlu1 %v1600_v60, %s2753_s26 }
 0xdf6   :  { %2626 = vrcp.f32 %v1593_v30 }
 0xe03   :  { %v2627_v13 = vpop.eup %2626 }
 0xe67   :  { %v1603_v61 = vpop.permute.xlu1 %1602 }
 0xe68   :  { %v1605_v35 = vadd.f32 %v1603_v61, %v1599_v45 }
 0xe6a   :  { %2628 = vtanh.f32 %v1605_v35 }
 0xe77   :  { %v2629_v59 = vpop.eup %2628 }
 0xe78   :  { %v3532_v15 = vmul.f32 %v2629_v59, %v2627_v13 }
 0xe7a   :  { %2427 = vmatmul.mubr.msk.f32.vlgmr.msra.gmra.mxu0 %vm261_vm1, %v3532_v15 }
 0xe7b   :  { %1830 = vmatpush1.msra.mxu0 %v3282_v28  ;;  %1877 = vmatprep.mubr.f32.mxu0 %v2752_v1 }
 0xe7c   :  { %1831 = vmatprep.subr.mxu0 %v3295_v52 }
 0xe7d   :  { %1832 = vmatpush1.msra.mxu0 %v3304_v53 }
 0xe7e   :  { %1833 = vmatprep.subr.mxu0 %v3320_v29 }
 0xe7f   :  { %1834 = vmatpush1.msra.mxu0 %v3328_v55 }
 0xe80   :  { %1835 = vmatprep.subr.mxu0 %v3344_v8 }
 0xe81   :  { %1836 = vmatpush1.msra.mxu0 %v3352_v37 }
 0xe82   :  { %1837 = vmatprep.subr.mxu0 %v3368_v38 }
 0xe83   :  { %1838 = vmatpush1.msra.mxu0 %v3376_v41 }
 0xe84   :  { %1839 = vmatprep.subr.mxu0 %v3386_v11 }
 0xe85   :  { %1840 = vmatpush1.msra.mxu0 %v3394_v57 }
 0xe86   :  { %1841 = vmatprep.subr.mxu0 %v3404_v47 }
 0xe87   :  { %1842 = vmatpush1.msra.mxu0 %v3412_v9 }
 0xe88   :  { %1843 = vmatprep.subr.mxu0 %v3422_v10 }
 0xe89   :  { %1844 = vmatpush1.msra.mxu0 %v3430_v12 }
 0xe8a   :  { %2029 = vmatprep.subr.mxu0 %v3273_v27 }
 0xf3a   :  { %v1679_v39 = vpop.f32.mrf.mxu0 }
 0xf3b   :  { %v1684_v42 = vadd.f32 %v1679_v39, %v3481_v5 }
 0xf3c   :  { %v1681_v44 = vpop.f32.mrf.mxu0 }
 0xf3d   :  { %v2428_v36 = vmul.f32 -1.442695, %v1684_v42  ;;  %v1685_v50 = vadd.f32 %v1681_v44, %v3483_v14 }
 0xf3f   :  { %2630 = vpow2.f32 %v2428_v36  ;;  %v2429_v46 = vmul.f32 -1.442695, %v1685_v50 }
 0xf40   :  { %2632 = vtanh.f32 %v1685_v50 }
 0xf4c   :  { %v2631_v51 = vpop.eup %2630 }
 0xf4d   :  { %v1692_v24 = vadd.f32 1.0, %v2631_v51  ;;  %v2633_v43 = vpop.eup %2632 }
 0xf4f   :  { %2634 = vrcp.f32 %v1692_v24 }
 0xf50   :  { %2636 = vpow2.f32 %v2429_v46 }
 0xf5c   :  { %v2635_v54 = vpop.eup %2634 }
 0xf5d   :  { %v1700_v56 = vmul.f32 %v2635_v54, %v2633_v43  ;;  %v2637_v63 = vpop.eup %2636  ;;  %v1699_v16 = vmul.f32 %v2635_v54, %v1605_v35 }
 0xf5e   :  { %v1693_v19 = vadd.f32 1.0, %v2637_v63 }
 0xf5f   :  { %1702 = vrot.lane.b32.xlu0 %v1700_v56, %s2753_s26 }
 0xf60   :  { %2638 = vrcp.f32 %v1693_v19 }
 0xf6d   :  { %v2639_v20 = vpop.eup %2638 }
 0xfd1   :  { %v1703_v5 = vpop.permute.xlu0 %1702 }
 0xfd2   :  { %v1705_v18 = vadd.f32 %v1703_v5, %v1699_v16 }
 0xfd4   :  { %2640 = vtanh.f32 %v1705_v18 }
 0xfe1   :  { %v2641_v14 = vpop.eup %2640 }
 0xfe2   :  { %v3556_v23 = vmul.f32 %v2641_v14, %v2639_v20 }
 0xfe4   :  { %2430 = vmatmul.mubr.msk.f32.vlgmr.msra.gmra.mxu1 %vm261_vm1, %v3556_v23 }
 0xfe5   :  { %1930 = vmatpush1.msra.mxu1 %v3282_v28  ;;  %1977 = vmatprep.mubr.f32.mxu1 %v2752_v1 }
 0xfe6   :  { %1931 = vmatprep.subr.mxu1 %v3295_v52 }
 0xfe7   :  { %1932 = vmatpush1.msra.mxu1 %v3304_v53 }
 0xfe8   :  { %1933 = vmatprep.subr.mxu1 %v3320_v29 }
 0xfe9   :  { %1934 = vmatpush1.msra.mxu1 %v3328_v55 }
 0xfea   :  { %1935 = vmatprep.subr.mxu1 %v3344_v8 }
 0xfeb   :  { %1936 = vmatpush1.msra.mxu1 %v3352_v37 }
 0xfec   :  { %1937 = vmatprep.subr.mxu1 %v3368_v38 }
 0xfed   :  { %1938 = vmatpush1.msra.mxu1 %v3376_v41 }
 0xfee   :  { %1939 = vmatprep.subr.mxu1 %v3386_v11 }
 0xfef   :  { %1940 = vmatpush1.msra.mxu1 %v3394_v57 }
 0xff0   :  { %1941 = vmatprep.subr.mxu1 %v3404_v47 }
 0xff1   :  { %1942 = vmatpush1.msra.mxu1 %v3412_v9 }
 0xff2   :  { %1943 = vmatprep.subr.mxu1 %v3422_v10 }
 0xff3   :  { %1944 = vmatpush1.msra.mxu1 %v3430_v12 }
 0xff4   :  { %2129 = vmatprep.subr.mxu1 %v3273_v27 }
0x10a4   :  { %v1779_v25 = vpop.f32.mrf.mxu1 }
0x10a5   :  { %v1784_v26 = vadd.f32 %v1779_v25, %v3485_v22 }
0x10a6   :  { %v1781_v62 = vpop.f32.mrf.mxu1 }
0x10a7   :  { %v2431_v31 = vmul.f32 -1.442695, %v1784_v26  ;;  %v1785_v7 = vadd.f32 %v1781_v62, %v3487_v40 }
0x10a9   :  { %2642 = vpow2.f32 %v2431_v31  ;;  %v2432_v30 = vmul.f32 -1.442695, %v1785_v7 }
0x10aa   :  { %2644 = vtanh.f32 %v1785_v7 }
0x10b6   :  { %v2643_v0 = vpop.eup %2642 }
0x10b7   :  { %v1792_v4 = vadd.f32 1.0, %v2643_v0  ;;  %v2645_v60 = vpop.eup %2644 }
0x10b9   :  { %2646 = vrcp.f32 %v1792_v4 }
0x10ba   :  { %2648 = vpow2.f32 %v2432_v30 }
0x10c6   :  { %v2647_v33 = vpop.eup %2646 }
0x10c7   :  { %v1800_v6 = vmul.f32 %v2647_v33, %v2645_v60  ;;  %v2649_v27 = vpop.eup %2648  ;;  %v1799_v61 = vmul.f32 %v2647_v33, %v1705_v18 }
0x10c8   :  { %v1793_v45 = vadd.f32 1.0, %v2649_v27 }
0x10c9   :  { %1802 = vrot.lane.b32.xlu1 %v1800_v6, %s2753_s26 }
0x10ca   :  { %2650 = vrcp.f32 %v1793_v45 }
0x10d7   :  { %v2651_v13 = vpop.eup %2650 }
0x113b   :  { %v1803_v22 = vpop.permute.xlu1 %1802 }
0x113c   :  { %v1805_v35 = vadd.f32 %v1803_v22, %v1799_v61 }
0x113e   :  { %2652 = vtanh.f32 %v1805_v35 }
0x114b   :  { %v2653_v40 = vpop.eup %2652 }
0x114c   :  { %v3580_v59 = vmul.f32 %v2653_v40, %v2651_v13 }
0x114e   :  { %2433 = vmatmul.mubr.msk.f32.vlgmr.msra.gmra.mxu0 %vm261_vm1, %v3580_v59 }
0x114f   :  { %2030 = vmatpush1.msra.mxu0 %v3282_v28  ;;  %2077 = vmatprep.mubr.f32.mxu0 %v2752_v1 }
0x1150   :  { %2031 = vmatprep.subr.mxu0 %v3295_v52 }
0x1151   :  { %2032 = vmatpush1.msra.mxu0 %v3304_v53 }
0x1152   :  { %2033 = vmatprep.subr.mxu0 %v3320_v29 }
0x1153   :  { %2034 = vmatpush1.msra.mxu0 %v3328_v55 }
0x1154   :  { %2035 = vmatprep.subr.mxu0 %v3344_v8 }
0x1155   :  { %2036 = vmatpush1.msra.mxu0 %v3352_v37 }
0x1156   :  { %2037 = vmatprep.subr.mxu0 %v3368_v38 }
0x1157   :  { %2038 = vmatpush1.msra.mxu0 %v3376_v41 }
0x1158   :  { %2039 = vmatprep.subr.mxu0 %v3386_v11 }
0x1159   :  { %2040 = vmatpush1.msra.mxu0 %v3394_v57 }
0x115a   :  { %2041 = vmatprep.subr.mxu0 %v3404_v47 }
0x115b   :  { %2042 = vmatpush1.msra.mxu0 %v3412_v9 }
0x115c   :  { %2043 = vmatprep.subr.mxu0 %v3422_v10 }
0x115d   :  { %2044 = vmatpush1.msra.mxu0 %v3430_v12 }
0x120e   :  { %v1879_v39 = vpop.f32.mrf.mxu0 }
0x120f   :  { %v1884_v42 = vadd.f32 %v1879_v39, %v3489_v49 }
0x1210   :  { %v1881_v44 = vpop.f32.mrf.mxu0 }
0x1211   :  { %v2434_v36 = vmul.f32 -1.442695, %v1884_v42  ;;  %v1885_v50 = vadd.f32 %v1881_v44, %v3491_v2 }
0x1213   :  { %2654 = vpow2.f32 %v2434_v36  ;;  %v2435_v46 = vmul.f32 -1.442695, %v1885_v50 }
0x1214   :  { %2656 = vtanh.f32 %v1885_v50 }
0x1220   :  { %v2655_v51 = vpop.eup %2654 }
0x1221   :  { %v1892_v24 = vadd.f32 1.0, %v2655_v51  ;;  %v2657_v43 = vpop.eup %2656 }
0x1223   :  { %2658 = vrcp.f32 %v1892_v24  ;;  %v2223_v24 = vld [vmem:[#allocation6 + $0x38] sm:$0xff] }
0x1224   :  { %2660 = vpow2.f32 %v2435_v46  ;;  %2470 = vmatprep.subr.mxu0 %v2223_v24 }
0x1230   :  { %v2659_v54 = vpop.eup %2658 }
0x1231   :  { %v1900_v56 = vmul.f32 %v2659_v54, %v2657_v43  ;;  %v2661_v63 = vpop.eup %2660  ;;  %v1899_v16 = vmul.f32 %v2659_v54, %v1805_v35  ;;  %v2222_v43 = vld [vmem:[#allocation6 + $0x30] sm:$0xff]  ;;  %v2221_v54 = vld [vmem:[#allocation6 + $0x28] sm:$0xff] }
0x1232   :  { %v1893_v19 = vadd.f32 1.0, %v2661_v63 }
0x1233   :  { %1902 = vrot.lane.b32.xlu0 %v1900_v56, %s2753_s26  ;;  %v2220_v56 = vld [vmem:[#allocation6 + $0x20] sm:$0xff] }
0x1234   :  { %2662 = vrcp.f32 %v1893_v19 }
0x1241   :  { %v2663_v18 = vpop.eup %2662 }
0x12a5   :  { %v1903_v49 = vpop.permute.xlu0 %1902 }
0x12a6   :  { %v1905_v5 = vadd.f32 %v1903_v49, %v1899_v16  ;;  %v2217_v16 = vld [vmem:[#allocation6 + $0x8] sm:$0xff]  ;;  %v2216_v49 = vld [vmem:[#allocation6] sm:$0xff] }
0x12a8   :  { %2664 = vtanh.f32 %v1905_v5 }
0x12b5   :  { %v2665_v2 = vpop.eup %2664 }
0x12b6   :  { %v3603_v20 = vmul.f32 %v2665_v2, %v2663_v18 }
0x12b8   :  { %2436 = vmatmul.mubr.msk.f32.vlgmr.msra.gmra.mxu1 %vm261_vm1, %v3603_v20 }
0x12b9   :  { %2130 = vmatpush1.msra.mxu1 %v3282_v28  ;;  %2177 = vmatprep.mubr.f32.mxu1 %v2752_v1 }
0x12ba   :  { %2131 = vmatprep.subr.mxu1 %v3295_v52 }
0x12bb   :  { %2132 = vmatpush1.msra.mxu1 %v3304_v53 }
0x12bc   :  { %2133 = vmatprep.subr.mxu1 %v3320_v29 }
0x12bd   :  { %2134 = vmatpush1.msra.mxu1 %v3328_v55 }
0x12be   :  { %2135 = vmatprep.subr.mxu1 %v3344_v8 }
0x12bf   :  { %2136 = vmatpush1.msra.mxu1 %v3352_v37 }
0x12c0   :  { %2137 = vmatprep.subr.mxu1 %v3368_v38 }
0x12c1   :  { %2138 = vmatpush1.msra.mxu1 %v3376_v41 }
0x12c2   :  { %2139 = vmatprep.subr.mxu1 %v3386_v11 }
0x12c3   :  { %2140 = vmatpush1.msra.mxu1 %v3394_v57 }
0x12c4   :  { %2141 = vmatprep.subr.mxu1 %v3404_v47 }
0x12c5   :  { %2142 = vmatpush1.msra.mxu1 %v3412_v9 }
0x12c6   :  { %2143 = vmatprep.subr.mxu1 %v3422_v10 }
0x12c7   :  { %2144 = vmatpush1.msra.mxu1 %v3430_v12 }
0x1378   :  { %v1979_v1 = vpop.f32.mrf.mxu1 }
0x1379   :  { %v1984_v28 = vadd.f32 %v1979_v1, %v3493_v48 }
0x137a   :  { %v1981_v53 = vpop.f32.mrf.mxu1 }
0x137b   :  { %v2437_v52 = vmul.f32 -1.442695, %v1984_v28  ;;  %v1985_v29 = vadd.f32 %v1981_v53, %v3495_v21 }
0x137d   :  { %2666 = vpow2.f32 %v2437_v52  ;;  %v2438_v11 = vmul.f32 -1.442695, %v1985_v29 }
0x137e   :  { %2668 = vtanh.f32 %v1985_v29 }
0x138a   :  { %v2667_v55 = vpop.eup %2666 }
0x138b   :  { %v1992_v8 = vadd.f32 1.0, %v2667_v55  ;;  %v2669_v37 = vpop.eup %2668 }
0x138d   :  { %2670 = vrcp.f32 %v1992_v8 }
0x138e   :  { %2672 = vpow2.f32 %v2438_v11  ;;  %v2212_v11 = vsel %vm1060_vm2, %v3603_v20, %v3580_v59 }
0x139a   :  { %v2671_v38 = vpop.eup %2670 }
0x139b   :  { %v2000_v41 = vmul.f32 %v2671_v38, %v2669_v37  ;;  %v2673_v57 = vpop.eup %2672  ;;  %v1999_v9 = vmul.f32 %v2671_v38, %v1905_v5 }
0x139c   :  { %v1993_v47 = vadd.f32 1.0, %v2673_v57 }
0x139d   :  { %2002 = vrot.lane.b32.xlu1 %v2000_v41, %s2753_s26  ;;  %v2211_v41 = vsel %vm1060_vm2, %v3580_v59, %v3603_v20  ;;  %v2445_v59 = vld [vmem:[#allocation3] ss:$0 sm:$0xff] }
0x139e   :  { %2674 = vrcp.f32 %v1993_v47 }
0x13ab   :  { %v2675_v48 = vpop.eup %2674 }
0x140f   :  { %v2003_v10 = vpop.permute.xlu1 %2002 }
0x1410   :  { %v2005_v12 = vadd.f32 %v2003_v10, %v1999_v9 }
0x1412   :  { %2676 = vtanh.f32 %v2005_v12 }
0x141f   :  { %v2677_v21 = vpop.eup %2676 }
0x1420   :  { %v3626_v14 = vmul.f32 %v2677_v21, %v2675_v48 }
0x1422   :  { %2439 = vmatmul.mubr.msk.f32.vlgmr.msra.gmra.mxu0 %vm261_vm1, %v3626_v14  ;;  %v2210_v38 = vsel %vm1060_vm2, %v3556_v23, %v3626_v14  ;;  %v2213_v57 = vsel %vm1060_vm2, %v3626_v14, %v3556_v23 }
0x1423   :  { %2471 = vmatpush3.msra.mxu0 %v2223_v24 }
0x1424   :  { %2472 = vmatprep.subr.mxu0 %v2222_v43 }
0x1425   :  { %2473 = vmatpush3.msra.mxu0 %v2222_v43 }
0x1426   :  { %2474 = vmatprep.subr.mxu0 %v2221_v54 }
0x1427   :  { %2475 = vmatpush3.msra.mxu0 %v2221_v54 }
0x1428   :  { %2476 = vmatprep.subr.mxu0 %v2220_v56 }
0x1429   :  { %2477 = vmatpush3.msra.mxu0 %v2220_v56 }
0x14e2   :  { %v2079_v25 = vpop.f32.mrf.mxu0 }
0x14e3   :  { %v2084_v26 = vadd.f32 %v2079_v25, %v3497_v32 }
0x14e4   :  { %v2081_v62 = vpop.f32.mrf.mxu0 }
0x14e5   :  { %v2440_v31 = vmul.f32 -1.442695, %v2084_v26  ;;  %v2085_v7 = vadd.f32 %v2081_v62, %v3499_v3 }
0x14e7   :  { %2678 = vpow2.f32 %v2440_v31  ;;  %v2441_v30 = vmul.f32 -1.442695, %v2085_v7 }
0x14e8   :  { %2680 = vtanh.f32 %v2085_v7 }
0x14f4   :  { %v2679_v0 = vpop.eup %2678 }
0x14f5   :  { %v2092_v4 = vadd.f32 1.0, %v2679_v0  ;;  %v2681_v60 = vpop.eup %2680 }
0x14f7   :  { %2682 = vrcp.f32 %v2092_v4 }
0x14f8   :  { %2684 = vpow2.f32 %v2441_v30 }
0x1504   :  { %v2683_v33 = vpop.eup %2682 }
0x1505   :  { %v2100_v6 = vmul.f32 %v2683_v33, %v2681_v60  ;;  %v2685_v27 = vpop.eup %2684  ;;  %v2099_v61 = vmul.f32 %v2683_v33, %v2005_v12 }
0x1506   :  { %v2093_v45 = vadd.f32 1.0, %v2685_v27 }
0x1507   :  { %2102 = vrot.lane.b32.xlu0 %v2100_v6, %s2753_s26 }
0x1508   :  { %2686 = vrcp.f32 %v2093_v45 }
0x1515   :  { %v2687_v35 = vpop.eup %2686 }
0x1579   :  { %v2103_v32 = vpop.permute.xlu0 %2102 }
0x157a   :  { %v2105_v22 = vadd.f32 %v2103_v32, %v2099_v61 }
0x157c   :  { %2688 = vtanh.f32 %v2105_v22 }
0x1589   :  { %v2689_v3 = vpop.eup %2688 }
0x158a   :  { %v3633_v13 = vmul.f32 %v2689_v3, %v2687_v35 }
0x158c   :  { %2442 = vmatmul.mubr.msk.f32.vlgmr.msra.gmra.mxu1 %vm261_vm1, %v3633_v13  ;;  %v2209_v37 = vsel %vm1060_vm2, %v3532_v15, %v3633_v13  ;;  %v2214_v47 = vsel %vm1060_vm2, %v3633_v13, %v3532_v15 }
0x164c   :  { %v2179_v40 = vpop.f32.mrf.mxu1 }
0x164d   :  { %v2184_v39 = vadd.f32 %v2179_v40, %v3501_v17  ;;  %v2219_v17 = vld [vmem:[#allocation6 + $0x18] sm:$0xff] }
0x164e   :  { %v2181_v36 = vpop.f32.mrf.mxu1  ;;  %2478 = vmatprep.subr.mxu0 %v2219_v17 }
0x164f   :  { %v2443_v42 = vmul.f32 -1.442695, %v2184_v39  ;;  %v2185_v44 = vadd.f32 %v2181_v36, %v3503_v34  ;;  %v2218_v34 = vld [vmem:[#allocation6 + $0x10] sm:$0xff]  ;;  %2479 = vmatpush3.msra.mxu0 %v2219_v17 }
0x1650   :  { %2480 = vmatprep.subr.mxu0 %v2218_v34 }
0x1651   :  { %2690 = vpow2.f32 %v2443_v42  ;;  %2481 = vmatpush3.msra.mxu0 %v2218_v34  ;;  %v2444_v5 = vmul.f32 -1.442695, %v2185_v44 }
0x1652   :  { %2692 = vtanh.f32 %v2185_v44  ;;  %2482 = vmatprep.subr.mxu0 %v2217_v16 }
0x1653   :  { %2483 = vmatpush3.msra.mxu0 %v2217_v16 }
0x1654   :  { %2484 = vmatprep.subr.mxu0 %v2216_v49 }
0x1655   :  { %2485 = vmatpush3.msra.mxu0 %v2216_v49 }
0x165e   :  { %v2691_v50 = vpop.eup %2690 }
0x165f   :  { %v2192_v51 = vadd.f32 1.0, %v2691_v50  ;;  %v2693_v46 = vpop.eup %2692 }
0x1661   :  { %2694 = vrcp.f32 %v2192_v51 }
0x1662   :  { %2696 = vpow2.f32 %v2444_v5 }
0x166e   :  { %v2695_v63 = vpop.eup %2694 }
0x166f   :  { %v2200_v19 = vmul.f32 %v2695_v63, %v2693_v46  ;;  %v2697_v18 = vpop.eup %2696  ;;  %v2199_v1 = vmul.f32 %v2695_v63, %v2105_v22 }
0x1670   :  { %v2193_v2 = vadd.f32 1.0, %v2697_v18 }
0x1671   :  { %2202 = vrot.lane.b32.xlu1 %v2200_v19, %s2753_s26 }
0x1672   :  { %2698 = vrcp.f32 %v2193_v2 }
0x167f   :  { %v2699_v53 = vpop.eup %2698 }
0x16e3   :  { %v2203_v28 = vpop.permute.xlu1 %2202 }
0x16e4   :  { %v2205_v52 = vadd.f32 %v2203_v28, %v2199_v1 }
0x16e6   :  { %2700 = vtanh.f32 %v2205_v52 }
0x16f3   :  { %v2701_v29 = vpop.eup %2700 }
0x16f4   :  { %v2207_v55 = vmul.f32 %v2701_v29, %v2699_v53 }
0x16f6   :  { %v2208_v8 = vsel %vm1060_vm2, %v3508_v58, %v2207_v55  ;;  %v2215_v9 = vsel %vm1060_vm2, %v2207_v55, %v3508_v58 }
0x16f7   :  { %2486 = vmatprep.mubr.msk.f32.mxu0 %vm261_vm1, %v2208_v8 }
0x16f8   :  { %2487 = vmatmul.mubr.msk.f32.vlgmr.msra.gmra.mxu0 %vm261_vm1, %v2209_v37 }
0x16f9   :  { %2489 = vmatprep.mubr.msk.f32.mxu0 %vm261_vm1, %v2210_v38 }
0x16fc   :  { %2490 = vmatmul.mubr.msk.f32.gmra.mxu0 %vm261_vm1, %v2211_v41 }
0x16fd   :  { %2492 = vmatprep.mubr.msk.f32.mxu0 %vm261_vm1, %v2212_v11 }
0x1700   :  { %2493 = vmatmul.mubr.msk.f32.gmra.mxu0 %vm261_vm1, %v2213_v57 }
0x1701   :  { %2495 = vmatprep.mubr.msk.f32.mxu0 %vm261_vm1, %v2214_v47 }
0x1704   :  { %2496 = vmatmul.mubr.msk.f32.gmra.mxu0 %vm261_vm1, %v2215_v9 }
0x17b8   :  { %v2488_v20 = vpop.f32.mrf.mxu0 }
0x17b9   :  { %v2327_v10 = vadd.f32 %v2488_v20, %v2445_v59 }
0x17ba   :  { %v2321_v12 = vpop.f32.mrf.mxu0 }
0x17bb   :  { %2362 = vst.msk [vmem:[%s3712_s10 + $0x8] sm:$0xff] %vm2360_vm3, %v2327_v10  ;;  %v2322_v23 = vadd.f32 %v2445_v59, %v2321_v12 }
0x17bc   :  { %v2491_v48 = vpop.f32.mrf.mxu0 }
0x17bd   :  { %2361 = vst.msk [vmem:[%s3712_s10] sm:$0xff] %vm2360_vm3, %v2322_v23  ;;  %v2337_v58 = vadd.f32 %v2491_v48, %v2445_v59 }
0x17be   :  { %v2331_v15 = vpop.f32.mrf.mxu0 }
0x17bf   :  { %2364 = vst.msk [vmem:[%s3712_s10 + $0x18] sm:$0xff] %vm2360_vm3, %v2337_v58  ;;  %v2332_v21 = vadd.f32 %v2445_v59, %v2331_v15 }
0x17c0   :  { %v2494_v14 = vpop.f32.mrf.mxu0 }
0x17c1   :  { %2363 = vst.msk [vmem:[%s3712_s10 + $0x10] sm:$0xff] %vm2360_vm3, %v2332_v21  ;;  %v2347_v25 = vadd.f32 %v2494_v14, %v2445_v59 }
0x17c2   :  { %v2341_v26 = vpop.f32.mrf.mxu0 }
0x17c3   :  { %2366 = vst.msk [vmem:[%s3712_s10 + $0x28] sm:$0xff] %vm2360_vm3, %v2347_v25  ;;  %v2342_v31 = vadd.f32 %v2445_v59, %v2341_v26 }
0x17c4   :  { %v2497_v62 = vpop.f32.mrf.mxu0 }
0x17c5   :  { %2365 = vst.msk [vmem:[%s3712_s10 + $0x20] sm:$0xff] %vm2360_vm3, %v2342_v31  ;;  %v2357_v7 = vadd.f32 %v2497_v62, %v2445_v59 }
0x17c6   :  { %v2351_v0 = vpop.f32.mrf.mxu0 }
0x17c7   :  { %2368 = vst.msk [vmem:[%s3712_s10 + $0x38] sm:$0xff] %vm2360_vm3, %v2357_v7  ;;  %v2352_v4 = vadd.f32 %v2445_v59, %v2351_v0 }
0x17c9   :  { %2367 = vst.msk [vmem:[%s3712_s10 + $0x30] sm:$0xff] %vm2360_vm3, %v2352_v4 }
0x17ca   :  { %2373 = vsyncpa [#allocation5], 1 }
0x17cb   :  { %2374 = vsyncpa [#allocation7], 1 }

</bundles_post_ra>
